<compile_context>
chip_gen: v7x
topology: tpu7x:2x2x1
jax: 0.10.0
libtpu: 0.0.40
codegen_flags: <defaults>
</compile_context>

<pallas_src>
import jax
import jax.numpy as jnp
import numpy as np
from jax import lax
from jax.experimental import pallas as pl
from jax.experimental.pallas import tpu as pltpu

BN_EPS = 1e-5
LANES = 128                              # vreg lane width
VMEM_LIMIT_BYTES = 32 * 1024 * 1024      # fits v5e/v6e (128 MiB) and v7x (64 MiB/TC)
K_PAD_MAX_OVERHEAD = 0.125               # pad K to a lane multiple only if cheap


def _device_kind():
    try:
        return jax.devices()[0].device_kind.lower()
    except Exception:
        return ""


_KIND = _device_kind()
_IS_V7X = ("v7" in _KIND) or ("7x" in _KIND)
# v7x: 3.2 TB/s HBM makes the ~0.35us per-grid-step overhead relatively larger
# and 64 MiB VMEM still has headroom -> bigger tiles.  512 already reaches
# ~85% of the HBM roofline on v5e/v6e.
DEFAULT_TILE_M = 2048 if _IS_V7X else 512
_USE_CORE_PARALLEL = _IS_V7X and hasattr(pltpu, "CORE_PARALLEL")


def _round_up(x, m):
    return (x + m - 1) // m * m


def _leading_semantics(axis_size):
    """Semantics for the independent leading grid axis.  On multi-TensorCore
    v7x parts ask for CORE_PARALLEL (both cores used); only when there are
    enough evenly-splittable blocks for the split to pay off."""
    if _USE_CORE_PARALLEL and axis_size >= 4 and axis_size % 2 == 0:
        return pltpu.CORE_PARALLEL
    return "parallel"


def _choose_m_tiling(m_rows, tile_m):
    """Return (tm, padded_rows).  Prefer a divisor of m_rows that is a
    multiple of 16 (bf16 sublane pack) so no extra full-array pad copy is
    materialized in front of the kernel."""
    if m_rows <= tile_m:
        return m_rows, m_rows                         # single tile, no pad
    if m_rows % 16 == 0:
        start = tile_m - tile_m % 16
        for cand in range(start, 127, -16):           # don't go below 128 rows
            if m_rows % cand == 0:
                return cand, m_rows
    tm = min(tile_m, _round_up(m_rows, 16))
    return tm, _round_up(m_rows, tm)


# ---------------------------------------------------------------- kernels ---
def _make_conv_stats_kernel(centered):
    """Pass 1: (TM, Kp) @ (Kp, Cp) bf16 matmul on the MXU (f32 accumulate),
    bf16 store of the conv tile, plus one (1, Cp) row of partial BatchNorm
    statistics per tile (merged globally in a tiny JAX epilogue)."""

    def kernel(p_ref, w_ref, o_ref, sum_ref, ssq_ref):
        acc = jnp.dot(p_ref[...], w_ref[...], preferred_element_type=jnp.float32)
        o_ref[...] = acc.astype(o_ref.dtype)
        s = jnp.sum(acc, axis=0, keepdims=True)                 # (1, Cp)
        if centered:
            # Sum of squared deviations about the tile mean; merged with
            # Chan's parallel-variance formula in the epilogue, so the
            # E[x^2]-E[x]^2 cancellation cannot bite when |mean| >> std.
            mu = s * (1.0 / acc.shape[0])
            d = acc - mu
            q = jnp.sum(d * d, axis=0, keepdims=True)
        else:  # padded (all-zero) rows present: plain sums stay exact
            q = jnp.sum(acc * acc, axis=0, keepdims=True)
        sum_ref[0] = s
        ssq_ref[0] = q

    return kernel


def _bn_relu_kernel(x_ref, scale_ref, shift_ref, o_ref):
    """Pass 2: y = relu(x * scale + shift); f32 math, bf16 store."""
    y = x_ref[...].astype(jnp.float32) * scale_ref[...] + shift_ref[...]
    o_ref[...] = jnp.maximum(y, 0.0).astype(o_ref.dtype)


def _maxpool_kernel(ee_ref, eo_ref, oe_ref, oo_ref, o_ref):
    """3x3 / stride-2 window max from the four parity views of the padded
    input.  All in-kernel slices are contiguous (no strided vector access)."""
    Ho, Wo = o_ref.shape[1], o_ref.shape[2]
    ee, eo = ee_ref[...], eo_ref[...]
    oe, oo = oe_ref[...], oo_ref[...]
    v = jnp.maximum(ee[:, :Ho, :Wo, :], ee[:, :Ho, 1:Wo + 1, :])
    v = jnp.maximum(v, ee[:, 1:Ho + 1, :Wo, :])
    v = jnp.maximum(v, ee[:, 1:Ho + 1, 1:Wo + 1, :])
    v = jnp.maximum(v, eo[:, :Ho, :, :])
    v = jnp.maximum(v, eo[:, 1:Ho + 1, :, :])
    v = jnp.maximum(v, oe[:, :, :Wo, :])
    v = jnp.maximum(v, oe[:, :, 1:Wo + 1, :])
    v = jnp.maximum(v, oo)
    o_ref[...] = v.astype(o_ref.dtype)


# ------------------------------------------------------------- jax glue -----
def _im2col_tap_major(x_nhwc, k, stride, pad, k_cols):
    """(M, k_cols) bf16 patches, tap-major / channel-minor.  Any extra zero
    columns (k_cols - k*k*C) are fused into the same concatenate so no
    separate pad copy is materialized."""
    N, H, W, C = x_nhwc.shape
    Ho = (H + 2 * pad - k) // stride + 1
    Wo = (W + 2 * pad - k) // stride + 1
    xp = jnp.pad(x_nhwc, ((0, 0), (pad, pad), (pad, pad), (0, 0)))
    taps = [xp[:, kh:kh + Ho * stride:stride, kw:kw + Wo * stride:stride, :]
            for kh in range(k) for kw in range(k)]
    extra = k_cols - k * k * C
    if extra:
        taps.append(jnp.zeros((N, Ho, Wo, extra), x_nhwc.dtype))
    patches = jnp.concatenate(taps, axis=-1)                    # (N,Ho,Wo,k_cols)
    return patches.reshape(N * Ho * Wo, k_cols), Ho, Wo


def conv_bn_relu(x_nhwc, w_oihw, gamma, beta, *, stride, pad,
                 tile_m=DEFAULT_TILE_M, out_dtype=jnp.bfloat16):
    Cout, Cin, k, _ = w_oihw.shape
    N, H, W, _ = x_nhwc.shape
    K = k * k * Cin
    Ho = (H + 2 * pad - k) // stride + 1
    Wo = (W + 2 * pad - k) // stride + 1
    M = N * Ho * Wo

    # Lane packing: fold `pack` consecutive output rows into the 128 lanes so
    # Cout=64 layers store full 128-wide vregs (row-major (M,64)==(M/2,128)).
    if Cout < LANES and LANES % Cout == 0 and M % (LANES // Cout) == 0:
        pack = LANES // Cout
    else:
        pack = 1   # NOTE: Cout<128 with pack==1 falls back to 64-lane masked
                   # stores -- correct, but a known perf cliff.

    # Pad the contraction dim so the packed Kp is a multiple of 128 lanes, but
    # only when cheap (skip layer 1's K=27 -> 128 blow-up).
    kp_target = _round_up(K * pack, LANES)
    if kp_target > K * pack and (kp_target - K * pack) <= K_PAD_MAX_OVERHEAD * K * pack:
        K_eff = kp_target // pack
    else:
        K_eff = K

    patches, Ho, Wo = _im2col_tap_major(x_nhwc.astype(jnp.bfloat16),
                                        k, stride, pad, K_eff)
    Cp, Kp, Mp = Cout * pack, K_eff * pack, M // pack

    # weight rows follow the tap-major/channel-minor patch order; block-
    # diagonal kron packs `pack` row-groups onto the 128 output lanes.
    wmat = jnp.transpose(w_oihw, (2, 3, 1, 0)).reshape(K, Cout).astype(jnp.bfloat16)
    if K_eff != K:
        wmat = jnp.pad(wmat, ((0, K_eff - K), (0, 0)))
    if pack > 1:
        wmat = jnp.kron(jnp.eye(pack, dtype=jnp.bfloat16), wmat)

    patches = patches.reshape(Mp, Kp)                 # free, row-major split

    tm, Mp_pad = _choose_m_tiling(Mp, tile_m)
    if Mp_pad != Mp:
        patches = jnp.pad(patches, ((0, Mp_pad - Mp), (0, 0)))
    n_tiles = Mp_pad // tm
    centered = (Mp_pad == Mp)          # every tile fully populated -> Chan merge

    cost = pl.CostEstimate(
        flops=2 * Mp_pad * Kp * Cp,
        transcendentals=0,
        bytes_accessed=(Mp_pad * Kp + Kp * Cp + Mp_pad * Cp) * 2
                       + 2 * n_tiles * Cp * 4)

    conv, psum, pssq = pl.pallas_call(
        _make_conv_stats_kernel(centered),
        grid=(n_tiles,),
        in_specs=[pl.BlockSpec((tm, Kp), lambda i: (i, 0)),
                  pl.BlockSpec((Kp, Cp), lambda i: (0, 0))],    # weights resident
        out_specs=[pl.BlockSpec((tm, Cp), lambda i: (i, 0)),
                   pl.BlockSpec((1, 1, Cp), lambda i: (i, 0, 0)),
                   pl.BlockSpec((1, 1, Cp), lambda i: (i, 0, 0))],
        out_shape=[jax.ShapeDtypeStruct((Mp_pad, Cp), jnp.bfloat16),
                   jax.ShapeDtypeStruct((n_tiles, 1, Cp), jnp.float32),
                   jax.ShapeDtypeStruct((n_tiles, 1, Cp), jnp.float32)],
        compiler_params=pltpu.CompilerParams(
            dimension_semantics=(_leading_semantics(n_tiles),),
            vmem_limit_bytes=VMEM_LIMIT_BYTES),
        cost_estimate=cost,
    )(patches, wmat)

    # ---- global BatchNorm statistics (train mode, biased variance) ----------
    S = psum[:, 0, :].reshape(n_tiles, pack, Cout)              # group sums
    Q = pssq[:, 0, :].reshape(n_tiles, pack, Cout)
    cnt = float(M)
    mean = S.sum(axis=(0, 1)) / cnt                             # (Cout,)
    if centered:
        g_mean = S / float(tm)
        m2 = Q.sum(axis=(0, 1)) + (float(tm) * (g_mean - mean) ** 2).sum(axis=(0, 1))
        var = jnp.maximum(m2 / cnt, 0.0)
    else:
        # zero-padded rows contribute nothing to sum / sum-of-squares
        var = jnp.maximum(Q.sum(axis=(0, 1)) / cnt - mean * mean, 0.0)
    inv = lax.rsqrt(var + BN_EPS)
    scale = gamma.astype(jnp.float32) * inv
    shift = beta.astype(jnp.float32) - mean * scale
    scale_p = jnp.tile(scale, pack).reshape(1, Cp)
    shift_p = jnp.tile(shift, pack).reshape(1, Cp)

    y = pl.pallas_call(
        _bn_relu_kernel,
        grid=(n_tiles,),
        in_specs=[pl.BlockSpec((tm, Cp), lambda i: (i, 0)),
                  pl.BlockSpec((1, Cp), lambda i: (0, 0)),
                  pl.BlockSpec((1, Cp), lambda i: (0, 0))],
        out_specs=pl.BlockSpec((tm, Cp), lambda i: (i, 0)),
        out_shape=jax.ShapeDtypeStruct((Mp_pad, Cp), out_dtype),
        compiler_params=pltpu.CompilerParams(
            dimension_semantics=(_leading_semantics(n_tiles),),
            vmem_limit_bytes=VMEM_LIMIT_BYTES),
    )(conv, scale_p, shift_p)

    y = y[:Mp].reshape(M, Cout)                                 # unpack lanes
    return y.reshape(N, Ho, Wo, Cout)


def maxpool_3x3_s2_p1(x_nhwc, *, out_dtype=jnp.float32):
    """3x3 / stride-2 / pad-1 max pool.  The padded input is split once into
    four (row-parity, col-parity) views so the in-kernel window reduction
    only needs contiguous slices (no 9 materialized full-size tap copies)."""
    N, H, W, C = x_nhwc.shape
    Ho = (H + 2 - 3) // 2 + 1
    Wo = (W + 2 - 3) // 2 + 1
    xp = jnp.pad(x_nhwc, ((0, 0), (1, 1), (1, 1), (0, 0)),
                 constant_values=-jnp.inf)                      # PyTorch pads -inf
    ev_h, od_h = slice(0, 2 * Ho + 1, 2), slice(1, 2 * Ho, 2)
    ev_w, od_w = slice(0, 2 * Wo + 1, 2), slice(1, 2 * Wo, 2)
    x_ee = xp[:, ev_h, ev_w, :]                                 # (N, Ho+1, Wo+1, C)
    x_eo = xp[:, ev_h, od_w, :]                                 # (N, Ho+1, Wo,   C)
    x_oe = xp[:, od_h, ev_w, :]                                 # (N, Ho,   Wo+1, C)
    x_oo = xp[:, od_h, od_w, :]                                 # (N, Ho,   Wo,   C)

    def spec(a):
        return pl.BlockSpec((1,) + a.shape[1:], lambda n: (n, 0, 0, 0))

    # TODO(synk): row-tile the per-image blocks (one even-row halo) for very
    #             large feature maps; whole images fit VMEM at PSPNet stem sizes.
    return pl.pallas_call(
        _maxpool_kernel,
        grid=(N,),
        in_specs=[spec(x_ee), spec(x_eo), spec(x_oe), spec(x_oo)],
        out_specs=pl.BlockSpec((1, Ho, Wo, C), lambda n: (n, 0, 0, 0)),
        out_shape=jax.ShapeDtypeStruct((N, Ho, Wo, C), out_dtype),
        compiler_params=pltpu.CompilerParams(
            dimension_semantics=(_leading_semantics(N),),
            vmem_limit_bytes=VMEM_LIMIT_BYTES),
    )(x_ee, x_eo, x_oe, x_oo)


def feature_map_convolution(x_nchw, params):
    # Cast to bf16 once at the top: every downstream stream (im2col taps, conv
    # intermediates, BN+ReLU activations) is HBM-bound, so half-width
    # intermediates are the biggest bytes win on v5e/v6e/v7x alike.
    x = jnp.transpose(x_nchw.astype(jnp.bfloat16), (0, 2, 3, 1))   # NCHW -> NHWC
    x = conv_bn_relu(x, params["w1"], params["g1"], params["b1"], stride=2, pad=1)
    x = conv_bn_relu(x, params["w2"], params["g2"], params["b2"], stride=1, pad=1)
    x = conv_bn_relu(x, params["w3"], params["g3"], params["b3"], stride=1, pad=1)
    x = maxpool_3x3_s2_p1(x, out_dtype=jnp.float32)
    return jnp.transpose(x, (0, 3, 1, 2))                          # NHWC -> NCHW


# --------------------------------------------------------- param init -------
def init_params(key):
    ks = jax.random.split(key, 9)

    def conv_w(k, cout, cin, ksz):
        fan_in = cin * ksz * ksz
        return (jax.random.normal(k, (cout, cin, ksz, ksz), jnp.float32)
                * (2.0 / fan_in) ** 0.5)

    return {
        "w1": conv_w(ks[0], 64, 3, 3),
        "g1": 1.0 + 0.1 * jax.random.normal(ks[1], (64,), jnp.float32),
        "b1": 0.1 * jax.random.normal(ks[2], (64,), jnp.float32),
        "w2": conv_w(ks[3], 64, 64, 3),
        "g2": 1.0 + 0.1 * jax.random.normal(ks[4], (64,), jnp.float32),
        "b2": 0.1 * jax.random.normal(ks[5], (64,), jnp.float32),
        "w3": conv_w(ks[6], 128, 64, 3),
        "g3": 1.0 + 0.1 * jax.random.normal(ks[7], (128,), jnp.float32),
        "b3": 0.1 * jax.random.normal(ks[8], (128,), jnp.float32),
    }


# -------------------------------------------------- pure-JAX reference ------
def _ref_block(x, w, g, b, stride, pad):
    y = lax.conv_general_dilated(x, w, (stride, stride),
                                 ((pad, pad), (pad, pad)),
                                 dimension_numbers=("NCHW", "OIHW", "NCHW"))
    mean = jnp.mean(y, axis=(0, 2, 3), keepdims=True)
    var = jnp.mean((y - mean) ** 2, axis=(0, 2, 3), keepdims=True)
    y = (y - mean) * lax.rsqrt(var + BN_EPS) * g.reshape(1, -1, 1, 1) \
        + b.reshape(1, -1, 1, 1)
    return jnp.maximum(y, 0.0)


def _ref_forward(x, p):
    x = _ref_block(x, p["w1"], p["g1"], p["b1"], 2, 1)
    x = _ref_block(x, p["w2"], p["g2"], p["b2"], 1, 1)
    x = _ref_block(x, p["w3"], p["g3"], p["b3"], 1, 1)
    return lax.reduce_window(x, -jnp.inf, lax.max,
                             window_dimensions=(1, 1, 3, 3),
                             window_strides=(1, 1, 2, 2),
                             padding=((0, 0), (0, 0), (1, 1), (1, 1)))


# ----------------------------------------------------------------- main -----
if __name__ == "__main__":
    root = jax.random.PRNGKey(0)
    k_x, k_p = jax.random.split(root)

    x = jax.random.normal(k_x, (2, 3, 16, 16), jnp.float32)   # NCHW like PyTorch
    params = init_params(k_p)

    fwd = jax.jit(feature_map_convolution)
    out = jax.block_until_ready(fwd(x, params))

    assert out.shape == (2, 128, 4, 4), out.shape

    ref = jax.block_until_ready(_ref_forward(x, params))
    np.testing.assert_allclose(np.asarray(out), np.asarray(ref),
                               atol=5e-2, rtol=5e-2)

    print("KERNEL_OK")
</pallas_src>

<mosaic_0001>
module attributes {stable_mosaic.version = 11 : i64} {
  func.func @kernel(%arg0: i32, %arg1: memref<64x54xbf16, #tpu.memory_space<vmem>>, %arg2: memref<54x128xbf16, #tpu.memory_space<vmem>>, %arg3: memref<64x128xbf16, #tpu.memory_space<vmem>>, %arg4: memref<1x1x128xf32, #tpu.memory_space<vmem>>, %arg5: memref<1x1x128xf32, #tpu.memory_space<vmem>>) attributes {dimension_semantics = [#tpu.dimension_semantics<parallel>], iteration_bounds = array<i64: 1>, scalar_prefetch = 0 : i64, scratch_operands = 0 : i64, tpu.core_type = #tpu.core_type<tc>, window_params = [{transform_indices = @transform_0, window_bounds = array<i64: 64, 54>}, {pipeline_mode = #tpu.pipeline_mode<synchronous>, transform_indices = @transform_1, window_bounds = array<i64: 54, 128>}, {transform_indices = @transform_2, window_bounds = array<i64: 64, 128>}, {transform_indices = @transform_3, window_bounds = array<i64: 1, 1, 128>}, {transform_indices = @transform_4, window_bounds = array<i64: 1, 1, 128>}]} {
    %c0 = arith.constant 0 : index
    %c0_0 = arith.constant 0 : index
    %0 = vector.load %arg1[%c0, %c0_0] : memref<64x54xbf16, #tpu.memory_space<vmem>>, vector<64x54xbf16>
    %c0_1 = arith.constant 0 : index
    %c0_2 = arith.constant 0 : index
    %1 = vector.load %arg2[%c0_1, %c0_2] : memref<54x128xbf16, #tpu.memory_space<vmem>>, vector<54x128xbf16>
    %cst = arith.constant dense<0.000000e+00> : vector<64x128xf32>
    %2 = tpu.matmul %0, %1, %cst {dimension_numbers = #tpu.dot_dimension_numbers<[1], [0], [0], [1], [0, 0, 1, 1], [], []>} : vector<64x54xbf16>, vector<54x128xbf16>, vector<64x128xf32> -> vector<64x128xf32>
    %3 = arith.truncf %2 : vector<64x128xf32> to vector<64x128xbf16>
    %c0_3 = arith.constant 0 : index
    %c0_4 = arith.constant 0 : index
    %4 = vector.load %arg3[%c0_3, %c0_4] : memref<64x128xbf16, #tpu.memory_space<vmem>>, vector<64x128xbf16>
    tpu.vector_store %arg3[%c0_3, %c0_4], %3 {strides = array<i32>} : memref<64x128xbf16, #tpu.memory_space<vmem>>, vector<64x128xbf16>,
    %cst_5 = arith.constant dense<0.000000e+00> : vector<128xf32>
    %5 = vector.multi_reduction <add>, %2, %cst_5 [0] : vector<64x128xf32> to vector<128xf32>
    %6 = vector.shape_cast %5 : vector<128xf32> to vector<1x128xf32>
    %cst_6 = arith.constant 1.562500e-02 : f32
    %7 = vector.broadcast %cst_6 : f32 to vector<1x128xf32>
    %8 = arith.mulf %6, %7 : vector<1x128xf32>
    %9 = vector.broadcast %8 : vector<1x128xf32> to vector<64x128xf32>
    %10 = arith.subf %2, %9 : vector<64x128xf32>
    %11 = arith.mulf %10, %10 : vector<64x128xf32>
    %cst_7 = arith.constant dense<0.000000e+00> : vector<128xf32>
    %12 = vector.multi_reduction <add>, %11, %cst_7 [0] : vector<64x128xf32> to vector<128xf32>
    %13 = vector.shape_cast %12 : vector<128xf32> to vector<1x128xf32>
    %c0_8 = arith.constant 0 : index
    %c0_9 = arith.constant 0 : index
    %c0_10 = arith.constant 0 : index
    %14 = vector.load %arg4[%c0_8, %c0_9, %c0_10] : memref<1x1x128xf32, #tpu.memory_space<vmem>>, vector<1x1x128xf32>
    %15 = vector.shape_cast %14 : vector<1x1x128xf32> to vector<1x128xf32>
    %16 = vector.shape_cast %6 : vector<1x128xf32> to vector<1x1x128xf32>
    tpu.vector_store %arg4[%c0_8, %c0_9, %c0_10], %16 {strides = array<i32>} : memref<1x1x128xf32, #tpu.memory_space<vmem>>, vector<1x1x128xf32>,
    %c0_11 = arith.constant 0 : index
    %c0_12 = arith.constant 0 : index
    %c0_13 = arith.constant 0 : index
    %17 = vector.load %arg5[%c0_11, %c0_12, %c0_13] : memref<1x1x128xf32, #tpu.memory_space<vmem>>, vector<1x1x128xf32>
    %18 = vector.shape_cast %17 : vector<1x1x128xf32> to vector<1x128xf32>
    %19 = vector.shape_cast %13 : vector<1x128xf32> to vector<1x1x128xf32>
    tpu.vector_store %arg5[%c0_11, %c0_12, %c0_13], %19 {strides = array<i32>} : memref<1x1x128xf32, #tpu.memory_space<vmem>>, vector<1x1x128xf32>,
    return
  }
  func.func @transform_0(%arg0: i32) -> (i32, i32) {
    %c0_i32 = arith.constant 0 : i32
    %c0_i32_0 = arith.constant 0 : i32
    return %arg0, %c0_i32 : i32, i32
  }
  func.func @transform_1(%arg0: i32) -> (i32, i32) {
    %c0_i32 = arith.constant 0 : i32
    %c0_i32_0 = arith.constant 0 : i32
    %c0_i32_1 = arith.constant 0 : i32
    return %c0_i32, %c0_i32_0 : i32, i32
  }
  func.func @transform_2(%arg0: i32) -> (i32, i32) {
    %c0_i32 = arith.constant 0 : i32
    %c0_i32_0 = arith.constant 0 : i32
    return %arg0, %c0_i32 : i32, i32
  }
  func.func @transform_3(%arg0: i32) -> (i32, i32, i32) {
    %c0_i32 = arith.constant 0 : i32
    %c0_i32_0 = arith.constant 0 : i32
    %c0_i32_1 = arith.constant 0 : i32
    return %arg0, %c0_i32, %c0_i32_0 : i32, i32, i32
  }
  func.func @transform_4(%arg0: i32) -> (i32, i32, i32) {
    %c0_i32 = arith.constant 0 : i32
    %c0_i32_0 = arith.constant 0 : i32
    %c0_i32_1 = arith.constant 0 : i32
    return %arg0, %c0_i32, %c0_i32_0 : i32, i32, i32
  }
}

module attributes {stable_mosaic.version = 11 : i64} {
  func.func @_bn_relu_kernel(%arg0: i32, %arg1: memref<64x128xbf16, #tpu.memory_space<vmem>>, %arg2: memref<1x128xf32, #tpu.memory_space<vmem>>, %arg3: memref<1x128xf32, #tpu.memory_space<vmem>>, %arg4: memref<64x128xbf16, #tpu.memory_space<vmem>>) attributes {dimension_semantics = [#tpu.dimension_semantics<parallel>], iteration_bounds = array<i64: 1>, scalar_prefetch = 0 : i64, scratch_operands = 0 : i64, tpu.core_type = #tpu.core_type<tc>, window_params = [{transform_indices = @transform_0, window_bounds = array<i64: 64, 128>}, {pipeline_mode = #tpu.pipeline_mode<synchronous>, transform_indices = @transform_1, window_bounds = array<i64: 1, 128>}, {pipeline_mode = #tpu.pipeline_mode<synchronous>, transform_indices = @transform_2, window_bounds = array<i64: 1, 128>}, {transform_indices = @transform_3, window_bounds = array<i64: 64, 128>}]} {
    %c0 = arith.constant 0 : index
    %c0_0 = arith.constant 0 : index
    %0 = vector.load %arg1[%c0, %c0_0] : memref<64x128xbf16, #tpu.memory_space<vmem>>, vector<64x128xbf16>
    %1 = arith.extf %0 : vector<64x128xbf16> to vector<64x128xf32>
    %c0_1 = arith.constant 0 : index
    %c0_2 = arith.constant 0 : index
    %2 = vector.load %arg2[%c0_1, %c0_2] : memref<1x128xf32, #tpu.memory_space<vmem>>, vector<1x128xf32>
    %3 = vector.broadcast %2 : vector<1x128xf32> to vector<64x128xf32>
    %4 = arith.mulf %1, %3 : vector<64x128xf32>
    %c0_3 = arith.constant 0 : index
    %c0_4 = arith.constant 0 : index
    %5 = vector.load %arg3[%c0_3, %c0_4] : memref<1x128xf32, #tpu.memory_space<vmem>>, vector<1x128xf32>
    %6 = vector.broadcast %5 : vector<1x128xf32> to vector<64x128xf32>
    %7 = arith.addf %4, %6 : vector<64x128xf32>
    %cst = arith.constant 0.000000e+00 : f32
    %8 = vector.broadcast %cst : f32 to vector<64x128xf32>
    %9 = arith.maximumf %7, %8 : vector<64x128xf32>
    %10 = arith.truncf %9 : vector<64x128xf32> to vector<64x128xbf16>
    %c0_5 = arith.constant 0 : index
    %c0_6 = arith.constant 0 : index
    %11 = vector.load %arg4[%c0_5, %c0_6] : memref<64x128xbf16, #tpu.memory_space<vmem>>, vector<64x128xbf16>
    tpu.vector_store %arg4[%c0_5, %c0_6], %10 {strides = array<i32>} : memref<64x128xbf16, #tpu.memory_space<vmem>>, vector<64x128xbf16>,
    return
  }
  func.func @transform_0(%arg0: i32) -> (i32, i32) {
    %c0_i32 = arith.constant 0 : i32
    %c0_i32_0 = arith.constant 0 : i32
    return %arg0, %c0_i32 : i32, i32
  }
  func.func @transform_1(%arg0: i32) -> (i32, i32) {
    %c0_i32 = arith.constant 0 : i32
    %c0_i32_0 = arith.constant 0 : i32
    %c0_i32_1 = arith.constant 0 : i32
    return %c0_i32, %c0_i32_0 : i32, i32
  }
  func.func @transform_2(%arg0: i32) -> (i32, i32) {
    %c0_i32 = arith.constant 0 : i32
    %c0_i32_0 = arith.constant 0 : i32
    %c0_i32_1 = arith.constant 0 : i32
    return %c0_i32, %c0_i32_0 : i32, i32
  }
  func.func @transform_3(%arg0: i32) -> (i32, i32) {
    %c0_i32 = arith.constant 0 : i32
    %c0_i32_0 = arith.constant 0 : i32
    return %arg0, %c0_i32 : i32, i32
  }
}

module attributes {stable_mosaic.version = 11 : i64} {
  func.func @kernel(%arg0: i32, %arg1: memref<64x1152xbf16, #tpu.memory_space<vmem>>, %arg2: memref<1152x128xbf16, #tpu.memory_space<vmem>>, %arg3: memref<64x128xbf16, #tpu.memory_space<vmem>>, %arg4: memref<1x1x128xf32, #tpu.memory_space<vmem>>, %arg5: memref<1x1x128xf32, #tpu.memory_space<vmem>>) attributes {dimension_semantics = [#tpu.dimension_semantics<parallel>], iteration_bounds = array<i64: 1>, scalar_prefetch = 0 : i64, scratch_operands = 0 : i64, tpu.core_type = #tpu.core_type<tc>, window_params = [{transform_indices = @transform_0, window_bounds = array<i64: 64, 1152>}, {pipeline_mode = #tpu.pipeline_mode<synchronous>, transform_indices = @transform_1, window_bounds = array<i64: 1152, 128>}, {transform_indices = @transform_2, window_bounds = array<i64: 64, 128>}, {transform_indices = @transform_3, window_bounds = array<i64: 1, 1, 128>}, {transform_indices = @transform_4, window_bounds = array<i64: 1, 1, 128>}]} {
    %c0 = arith.constant 0 : index
    %c0_0 = arith.constant 0 : index
    %0 = vector.load %arg1[%c0, %c0_0] : memref<64x1152xbf16, #tpu.memory_space<vmem>>, vector<64x1152xbf16>
    %c0_1 = arith.constant 0 : index
    %c0_2 = arith.constant 0 : index
    %1 = vector.load %arg2[%c0_1, %c0_2] : memref<1152x128xbf16, #tpu.memory_space<vmem>>, vector<1152x128xbf16>
    %cst = arith.constant dense<0.000000e+00> : vector<64x128xf32>
    %2 = tpu.matmul %0, %1, %cst {dimension_numbers = #tpu.dot_dimension_numbers<[1], [0], [0], [1], [0, 0, 1, 1], [], []>} : vector<64x1152xbf16>, vector<1152x128xbf16>, vector<64x128xf32> -> vector<64x128xf32>
    %3 = arith.truncf %2 : vector<64x128xf32> to vector<64x128xbf16>
    %c0_3 = arith.constant 0 : index
    %c0_4 = arith.constant 0 : index
    %4 = vector.load %arg3[%c0_3, %c0_4] : memref<64x128xbf16, #tpu.memory_space<vmem>>, vector<64x128xbf16>
    tpu.vector_store %arg3[%c0_3, %c0_4], %3 {strides = array<i32>} : memref<64x128xbf16, #tpu.memory_space<vmem>>, vector<64x128xbf16>,
    %cst_5 = arith.constant dense<0.000000e+00> : vector<128xf32>
    %5 = vector.multi_reduction <add>, %2, %cst_5 [0] : vector<64x128xf32> to vector<128xf32>
    %6 = vector.shape_cast %5 : vector<128xf32> to vector<1x128xf32>
    %cst_6 = arith.constant 1.562500e-02 : f32
    %7 = vector.broadcast %cst_6 : f32 to vector<1x128xf32>
    %8 = arith.mulf %6, %7 : vector<1x128xf32>
    %9 = vector.broadcast %8 : vector<1x128xf32> to vector<64x128xf32>
    %10 = arith.subf %2, %9 : vector<64x128xf32>
    %11 = arith.mulf %10, %10 : vector<64x128xf32>
    %cst_7 = arith.constant dense<0.000000e+00> : vector<128xf32>
    %12 = vector.multi_reduction <add>, %11, %cst_7 [0] : vector<64x128xf32> to vector<128xf32>
    %13 = vector.shape_cast %12 : vector<128xf32> to vector<1x128xf32>
    %c0_8 = arith.constant 0 : index
    %c0_9 = arith.constant 0 : index
    %c0_10 = arith.constant 0 : index
    %14 = vector.load %arg4[%c0_8, %c0_9, %c0_10] : memref<1x1x128xf32, #tpu.memory_space<vmem>>, vector<1x1x128xf32>
    %15 = vector.shape_cast %14 : vector<1x1x128xf32> to vector<1x128xf32>
    %16 = vector.shape_cast %6 : vector<1x128xf32> to vector<1x1x128xf32>
    tpu.vector_store %arg4[%c0_8, %c0_9, %c0_10], %16 {strides = array<i32>} : memref<1x1x128xf32, #tpu.memory_space<vmem>>, vector<1x1x128xf32>,
    %c0_11 = arith.constant 0 : index
    %c0_12 = arith.constant 0 : index
    %c0_13 = arith.constant 0 : index
    %17 = vector.load %arg5[%c0_11, %c0_12, %c0_13] : memref<1x1x128xf32, #tpu.memory_space<vmem>>, vector<1x1x128xf32>
    %18 = vector.shape_cast %17 : vector<1x1x128xf32> to vector<1x128xf32>
    %19 = vector.shape_cast %13 : vector<1x128xf32> to vector<1x1x128xf32>
    tpu.vector_store %arg5[%c0_11, %c0_12, %c0_13], %19 {strides = array<i32>} : memref<1x1x128xf32, #tpu.memory_space<vmem>>, vector<1x1x128xf32>,
    return
  }
  func.func @transform_0(%arg0: i32) -> (i32, i32) {
    %c0_i32 = arith.constant 0 : i32
    %c0_i32_0 = arith.constant 0 : i32
    return %arg0, %c0_i32 : i32, i32
  }
  func.func @transform_1(%arg0: i32) -> (i32, i32) {
    %c0_i32 = arith.constant 0 : i32
    %c0_i32_0 = arith.constant 0 : i32
    %c0_i32_1 = arith.constant 0 : i32
    return %c0_i32, %c0_i32_0 : i32, i32
  }
  func.func @transform_2(%arg0: i32) -> (i32, i32) {
    %c0_i32 = arith.constant 0 : i32
    %c0_i32_0 = arith.constant 0 : i32
    return %arg0, %c0_i32 : i32, i32
  }
  func.func @transform_3(%arg0: i32) -> (i32, i32, i32) {
    %c0_i32 = arith.constant 0 : i32
    %c0_i32_0 = arith.constant 0 : i32
    %c0_i32_1 = arith.constant 0 : i32
    return %arg0, %c0_i32, %c0_i32_0 : i32, i32, i32
  }
  func.func @transform_4(%arg0: i32) -> (i32, i32, i32) {
    %c0_i32 = arith.constant 0 : i32
    %c0_i32_0 = arith.constant 0 : i32
    %c0_i32_1 = arith.constant 0 : i32
    return %arg0, %c0_i32, %c0_i32_0 : i32, i32, i32
  }
}

module attributes {stable_mosaic.version = 11 : i64} {
  func.func @kernel(%arg0: i32, %arg1: memref<128x640xbf16, #tpu.memory_space<vmem>>, %arg2: memref<640x128xbf16, #tpu.memory_space<vmem>>, %arg3: memref<128x128xbf16, #tpu.memory_space<vmem>>, %arg4: memref<1x1x128xf32, #tpu.memory_space<vmem>>, %arg5: memref<1x1x128xf32, #tpu.memory_space<vmem>>) attributes {dimension_semantics = [#tpu.dimension_semantics<parallel>], iteration_bounds = array<i64: 1>, scalar_prefetch = 0 : i64, scratch_operands = 0 : i64, tpu.core_type = #tpu.core_type<tc>, window_params = [{transform_indices = @transform_0, window_bounds = array<i64: 128, 640>}, {pipeline_mode = #tpu.pipeline_mode<synchronous>, transform_indices = @transform_1, window_bounds = array<i64: 640, 128>}, {transform_indices = @transform_2, window_bounds = array<i64: 128, 128>}, {transform_indices = @transform_3, window_bounds = array<i64: 1, 1, 128>}, {transform_indices = @transform_4, window_bounds = array<i64: 1, 1, 128>}]} {
    %c0 = arith.constant 0 : index
    %c0_0 = arith.constant 0 : index
    %0 = vector.load %arg1[%c0, %c0_0] : memref<128x640xbf16, #tpu.memory_space<vmem>>, vector<128x640xbf16>
    %c0_1 = arith.constant 0 : index
    %c0_2 = arith.constant 0 : index
    %1 = vector.load %arg2[%c0_1, %c0_2] : memref<640x128xbf16, #tpu.memory_space<vmem>>, vector<640x128xbf16>
    %cst = arith.constant dense<0.000000e+00> : vector<128x128xf32>
    %2 = tpu.matmul %0, %1, %cst {dimension_numbers = #tpu.dot_dimension_numbers<[1], [0], [0], [1], [0, 0, 1, 1], [], []>} : vector<128x640xbf16>, vector<640x128xbf16>, vector<128x128xf32> -> vector<128x128xf32>
    %3 = arith.truncf %2 : vector<128x128xf32> to vector<128x128xbf16>
    %c0_3 = arith.constant 0 : index
    %c0_4 = arith.constant 0 : index
    %4 = vector.load %arg3[%c0_3, %c0_4] : memref<128x128xbf16, #tpu.memory_space<vmem>>, vector<128x128xbf16>
    tpu.vector_store %arg3[%c0_3, %c0_4], %3 {strides = array<i32>} : memref<128x128xbf16, #tpu.memory_space<vmem>>, vector<128x128xbf16>,
    %cst_5 = arith.constant dense<0.000000e+00> : vector<128xf32>
    %5 = vector.multi_reduction <add>, %2, %cst_5 [0] : vector<128x128xf32> to vector<128xf32>
    %6 = vector.shape_cast %5 : vector<128xf32> to vector<1x128xf32>
    %cst_6 = arith.constant 7.812500e-03 : f32
    %7 = vector.broadcast %cst_6 : f32 to vector<1x128xf32>
    %8 = arith.mulf %6, %7 : vector<1x128xf32>
    %9 = vector.broadcast %8 : vector<1x128xf32> to vector<128x128xf32>
    %10 = arith.subf %2, %9 : vector<128x128xf32>
    %11 = arith.mulf %10, %10 : vector<128x128xf32>
    %cst_7 = arith.constant dense<0.000000e+00> : vector<128xf32>
    %12 = vector.multi_reduction <add>, %11, %cst_7 [0] : vector<128x128xf32> to vector<128xf32>
    %13 = vector.shape_cast %12 : vector<128xf32> to vector<1x128xf32>
    %c0_8 = arith.constant 0 : index
    %c0_9 = arith.constant 0 : index
    %c0_10 = arith.constant 0 : index
    %14 = vector.load %arg4[%c0_8, %c0_9, %c0_10] : memref<1x1x128xf32, #tpu.memory_space<vmem>>, vector<1x1x128xf32>
    %15 = vector.shape_cast %14 : vector<1x1x128xf32> to vector<1x128xf32>
    %16 = vector.shape_cast %6 : vector<1x128xf32> to vector<1x1x128xf32>
    tpu.vector_store %arg4[%c0_8, %c0_9, %c0_10], %16 {strides = array<i32>} : memref<1x1x128xf32, #tpu.memory_space<vmem>>, vector<1x1x128xf32>,
    %c0_11 = arith.constant 0 : index
    %c0_12 = arith.constant 0 : index
    %c0_13 = arith.constant 0 : index
    %17 = vector.load %arg5[%c0_11, %c0_12, %c0_13] : memref<1x1x128xf32, #tpu.memory_space<vmem>>, vector<1x1x128xf32>
    %18 = vector.shape_cast %17 : vector<1x1x128xf32> to vector<1x128xf32>
    %19 = vector.shape_cast %13 : vector<1x128xf32> to vector<1x1x128xf32>
    tpu.vector_store %arg5[%c0_11, %c0_12, %c0_13], %19 {strides = array<i32>} : memref<1x1x128xf32, #tpu.memory_space<vmem>>, vector<1x1x128xf32>,
    return
  }
  func.func @transform_0(%arg0: i32) -> (i32, i32) {
    %c0_i32 = arith.constant 0 : i32
    %c0_i32_0 = arith.constant 0 : i32
    return %arg0, %c0_i32 : i32, i32
  }
  func.func @transform_1(%arg0: i32) -> (i32, i32) {
    %c0_i32 = arith.constant 0 : i32
    %c0_i32_0 = arith.constant 0 : i32
    %c0_i32_1 = arith.constant 0 : i32
    return %c0_i32, %c0_i32_0 : i32, i32
  }
  func.func @transform_2(%arg0: i32) -> (i32, i32) {
    %c0_i32 = arith.constant 0 : i32
    %c0_i32_0 = arith.constant 0 : i32
    return %arg0, %c0_i32 : i32, i32
  }
  func.func @transform_3(%arg0: i32) -> (i32, i32, i32) {
    %c0_i32 = arith.constant 0 : i32
    %c0_i32_0 = arith.constant 0 : i32
    %c0_i32_1 = arith.constant 0 : i32
    return %arg0, %c0_i32, %c0_i32_0 : i32, i32, i32
  }
  func.func @transform_4(%arg0: i32) -> (i32, i32, i32) {
    %c0_i32 = arith.constant 0 : i32
    %c0_i32_0 = arith.constant 0 : i32
    %c0_i32_1 = arith.constant 0 : i32
    return %arg0, %c0_i32, %c0_i32_0 : i32, i32, i32
  }
}

module attributes {stable_mosaic.version = 11 : i64} {
  func.func @_bn_relu_kernel(%arg0: i32, %arg1: memref<128x128xbf16, #tpu.memory_space<vmem>>, %arg2: memref<1x128xf32, #tpu.memory_space<vmem>>, %arg3: memref<1x128xf32, #tpu.memory_space<vmem>>, %arg4: memref<128x128xbf16, #tpu.memory_space<vmem>>) attributes {dimension_semantics = [#tpu.dimension_semantics<parallel>], iteration_bounds = array<i64: 1>, scalar_prefetch = 0 : i64, scratch_operands = 0 : i64, tpu.core_type = #tpu.core_type<tc>, window_params = [{transform_indices = @transform_0, window_bounds = array<i64: 128, 128>}, {pipeline_mode = #tpu.pipeline_mode<synchronous>, transform_indices = @transform_1, window_bounds = array<i64: 1, 128>}, {pipeline_mode = #tpu.pipeline_mode<synchronous>, transform_indices = @transform_2, window_bounds = array<i64: 1, 128>}, {transform_indices = @transform_3, window_bounds = array<i64: 128, 128>}]} {
    %c0 = arith.constant 0 : index
    %c0_0 = arith.constant 0 : index
    %0 = vector.load %arg1[%c0, %c0_0] : memref<128x128xbf16, #tpu.memory_space<vmem>>, vector<128x128xbf16>
    %1 = arith.extf %0 : vector<128x128xbf16> to vector<128x128xf32>
    %c0_1 = arith.constant 0 : index
    %c0_2 = arith.constant 0 : index
    %2 = vector.load %arg2[%c0_1, %c0_2] : memref<1x128xf32, #tpu.memory_space<vmem>>, vector<1x128xf32>
    %3 = vector.broadcast %2 : vector<1x128xf32> to vector<128x128xf32>
    %4 = arith.mulf %1, %3 : vector<128x128xf32>
    %c0_3 = arith.constant 0 : index
    %c0_4 = arith.constant 0 : index
    %5 = vector.load %arg3[%c0_3, %c0_4] : memref<1x128xf32, #tpu.memory_space<vmem>>, vector<1x128xf32>
    %6 = vector.broadcast %5 : vector<1x128xf32> to vector<128x128xf32>
    %7 = arith.addf %4, %6 : vector<128x128xf32>
    %cst = arith.constant 0.000000e+00 : f32
    %8 = vector.broadcast %cst : f32 to vector<128x128xf32>
    %9 = arith.maximumf %7, %8 : vector<128x128xf32>
    %10 = arith.truncf %9 : vector<128x128xf32> to vector<128x128xbf16>
    %c0_5 = arith.constant 0 : index
    %c0_6 = arith.constant 0 : index
    %11 = vector.load %arg4[%c0_5, %c0_6] : memref<128x128xbf16, #tpu.memory_space<vmem>>, vector<128x128xbf16>
    tpu.vector_store %arg4[%c0_5, %c0_6], %10 {strides = array<i32>} : memref<128x128xbf16, #tpu.memory_space<vmem>>, vector<128x128xbf16>,
    return
  }
  func.func @transform_0(%arg0: i32) -> (i32, i32) {
    %c0_i32 = arith.constant 0 : i32
    %c0_i32_0 = arith.constant 0 : i32
    return %arg0, %c0_i32 : i32, i32
  }
  func.func @transform_1(%arg0: i32) -> (i32, i32) {
    %c0_i32 = arith.constant 0 : i32
    %c0_i32_0 = arith.constant 0 : i32
    %c0_i32_1 = arith.constant 0 : i32
    return %c0_i32, %c0_i32_0 : i32, i32
  }
  func.func @transform_2(%arg0: i32) -> (i32, i32) {
    %c0_i32 = arith.constant 0 : i32
    %c0_i32_0 = arith.constant 0 : i32
    %c0_i32_1 = arith.constant 0 : i32
    return %c0_i32, %c0_i32_0 : i32, i32
  }
  func.func @transform_3(%arg0: i32) -> (i32, i32) {
    %c0_i32 = arith.constant 0 : i32
    %c0_i32_0 = arith.constant 0 : i32
    return %arg0, %c0_i32 : i32, i32
  }
}

module attributes {stable_mosaic.version = 11 : i64} {
  func.func @_maxpool_kernel(%arg0: i32, %arg1: memref<1x5x5x128xbf16, #tpu.memory_space<vmem>>, %arg2: memref<1x5x4x128xbf16, #tpu.memory_space<vmem>>, %arg3: memref<1x4x5x128xbf16, #tpu.memory_space<vmem>>, %arg4: memref<1x4x4x128xbf16, #tpu.memory_space<vmem>>, %arg5: memref<1x4x4x128xf32, #tpu.memory_space<vmem>>) attributes {dimension_semantics = [#tpu.dimension_semantics<parallel>], iteration_bounds = array<i64: 2>, scalar_prefetch = 0 : i64, scratch_operands = 0 : i64, tpu.core_type = #tpu.core_type<tc>, window_params = [{transform_indices = @transform_0, window_bounds = array<i64: 1, 5, 5, 128>}, {transform_indices = @transform_1, window_bounds = array<i64: 1, 5, 4, 128>}, {transform_indices = @transform_2, window_bounds = array<i64: 1, 4, 5, 128>}, {transform_indices = @transform_3, window_bounds = array<i64: 1, 4, 4, 128>}, {transform_indices = @transform_4, window_bounds = array<i64: 1, 4, 4, 128>}]} {
    %c0 = arith.constant 0 : index
    %c0_0 = arith.constant 0 : index
    %c0_1 = arith.constant 0 : index
    %c0_2 = arith.constant 0 : index
    %0 = vector.load %arg1[%c0, %c0_0, %c0_1, %c0_2] : memref<1x5x5x128xbf16, #tpu.memory_space<vmem>>, vector<1x5x5x128xbf16>
    %c0_3 = arith.constant 0 : index
    %c0_4 = arith.constant 0 : index
    %c0_5 = arith.constant 0 : index
    %c0_6 = arith.constant 0 : index
    %1 = vector.load %arg2[%c0_3, %c0_4, %c0_5, %c0_6] : memref<1x5x4x128xbf16, #tpu.memory_space<vmem>>, vector<1x5x4x128xbf16>
    %c0_7 = arith.constant 0 : index
    %c0_8 = arith.constant 0 : index
    %c0_9 = arith.constant 0 : index
    %c0_10 = arith.constant 0 : index
    %2 = vector.load %arg3[%c0_7, %c0_8, %c0_9, %c0_10] : memref<1x4x5x128xbf16, #tpu.memory_space<vmem>>, vector<1x4x5x128xbf16>
    %c0_11 = arith.constant 0 : index
    %c0_12 = arith.constant 0 : index
    %c0_13 = arith.constant 0 : index
    %c0_14 = arith.constant 0 : index
    %3 = vector.load %arg4[%c0_11, %c0_12, %c0_13, %c0_14] : memref<1x4x4x128xbf16, #tpu.memory_space<vmem>>, vector<1x4x4x128xbf16>
    %4 = vector.extract_strided_slice %0 {offsets = [0, 0, 0, 0], sizes = [1, 4, 4, 128], strides = [1, 1, 1, 1]} : vector<1x5x5x128xbf16> to vector<1x4x4x128xbf16>
    %5 = vector.extract_strided_slice %0 {offsets = [0, 0, 1, 0], sizes = [1, 4, 4, 128], strides = [1, 1, 1, 1]} : vector<1x5x5x128xbf16> to vector<1x4x4x128xbf16>
    %6 = arith.maximumf %4, %5 : vector<1x4x4x128xbf16>
    %7 = vector.extract_strided_slice %0 {offsets = [0, 1, 0, 0], sizes = [1, 4, 4, 128], strides = [1, 1, 1, 1]} : vector<1x5x5x128xbf16> to vector<1x4x4x128xbf16>
    %8 = arith.maximumf %6, %7 : vector<1x4x4x128xbf16>
    %9 = vector.extract_strided_slice %0 {offsets = [0, 1, 1, 0], sizes = [1, 4, 4, 128], strides = [1, 1, 1, 1]} : vector<1x5x5x128xbf16> to vector<1x4x4x128xbf16>
    %10 = arith.maximumf %8, %9 : vector<1x4x4x128xbf16>
    %11 = vector.extract_strided_slice %1 {offsets = [0, 0, 0, 0], sizes = [1, 4, 4, 128], strides = [1, 1, 1, 1]} : vector<1x5x4x128xbf16> to vector<1x4x4x128xbf16>
    %12 = arith.maximumf %10, %11 : vector<1x4x4x128xbf16>
    %13 = vector.extract_strided_slice %1 {offsets = [0, 1, 0, 0], sizes = [1, 4, 4, 128], strides = [1, 1, 1, 1]} : vector<1x5x4x128xbf16> to vector<1x4x4x128xbf16>
    %14 = arith.maximumf %12, %13 : vector<1x4x4x128xbf16>
    %15 = vector.extract_strided_slice %2 {offsets = [0, 0, 0, 0], sizes = [1, 4, 4, 128], strides = [1, 1, 1, 1]} : vector<1x4x5x128xbf16> to vector<1x4x4x128xbf16>
    %16 = arith.maximumf %14, %15 : vector<1x4x4x128xbf16>
    %17 = vector.extract_strided_slice %2 {offsets = [0, 0, 1, 0], sizes = [1, 4, 4, 128], strides = [1, 1, 1, 1]} : vector<1x4x5x128xbf16> to vector<1x4x4x128xbf16>
    %18 = arith.maximumf %16, %17 : vector<1x4x4x128xbf16>
    %19 = arith.maximumf %18, %3 : vector<1x4x4x128xbf16>
    %20 = arith.extf %19 : vector<1x4x4x128xbf16> to vector<1x4x4x128xf32>
    %c0_15 = arith.constant 0 : index
    %c0_16 = arith.constant 0 : index
    %c0_17 = arith.constant 0 : index
    %c0_18 = arith.constant 0 : index
    %21 = vector.load %arg5[%c0_15, %c0_16, %c0_17, %c0_18] : memref<1x4x4x128xf32, #tpu.memory_space<vmem>>, vector<1x4x4x128xf32>
    tpu.vector_store %arg5[%c0_15, %c0_16, %c0_17, %c0_18], %20 {strides = array<i32>} : memref<1x4x4x128xf32, #tpu.memory_space<vmem>>, vector<1x4x4x128xf32>,
    return
  }
  func.func @transform_0(%arg0: i32) -> (i32, i32, i32, i32) {
    %c0_i32 = arith.constant 0 : i32
    %c0_i32_0 = arith.constant 0 : i32
    %c0_i32_1 = arith.constant 0 : i32
    %c0_i32_2 = arith.constant 0 : i32
    return %arg0, %c0_i32, %c0_i32_0, %c0_i32_1 : i32, i32, i32, i32
  }
  func.func @transform_1(%arg0: i32) -> (i32, i32, i32, i32) {
    %c0_i32 = arith.constant 0 : i32
    %c0_i32_0 = arith.constant 0 : i32
    %c0_i32_1 = arith.constant 0 : i32
    %c0_i32_2 = arith.constant 0 : i32
    return %arg0, %c0_i32, %c0_i32_0, %c0_i32_1 : i32, i32, i32, i32
  }
  func.func @transform_2(%arg0: i32) -> (i32, i32, i32, i32) {
    %c0_i32 = arith.constant 0 : i32
    %c0_i32_0 = arith.constant 0 : i32
    %c0_i32_1 = arith.constant 0 : i32
    %c0_i32_2 = arith.constant 0 : i32
    return %arg0, %c0_i32, %c0_i32_0, %c0_i32_1 : i32, i32, i32, i32
  }
  func.func @transform_3(%arg0: i32) -> (i32, i32, i32, i32) {
    %c0_i32 = arith.constant 0 : i32
    %c0_i32_0 = arith.constant 0 : i32
    %c0_i32_1 = arith.constant 0 : i32
    %c0_i32_2 = arith.constant 0 : i32
    return %arg0, %c0_i32, %c0_i32_0, %c0_i32_1 : i32, i32, i32, i32
  }
  func.func @transform_4(%arg0: i32) -> (i32, i32, i32, i32) {
    %c0_i32 = arith.constant 0 : i32
    %c0_i32_0 = arith.constant 0 : i32
    %c0_i32_1 = arith.constant 0 : i32
    %c0_i32_2 = arith.constant 0 : i32
    return %arg0, %c0_i32, %c0_i32_0, %c0_i32_1 : i32, i32, i32, i32
  }
}

</mosaic_0001>

<bundles_post_ra>
// kernel: squeeze.4
= control target key start
LH: loop header
LB: loop body
LE: loop exit
PB: predicated region body
PF: predicated region fallthrough
CT: control target
= control target key end

     0   :  { %vm7_vm0 = vcmask 523264   ;;  %s39_s0 = inlined_call_operand.vmem [shape: f32[128], index: 0, kind: input, shape index: {}]   ;;  %s40_s1 = inlined_call_operand.vmem [shape: f32[2,64], index: 1, kind: output, shape index: {}]  }
   0x1   :  { %v4_v0 = vld [vmem:[%s39_s0] sm:$0x1]  ;;  %s22_s0 = smov 64  }
   0x2   :  { %5 = vst [vmem:[#allocation1] sm:$0x1] %v4_v0 }
   0x9   :  { %v9_v1 = vld [vmem:[#allocation1] sm:$0x1]  }
   0xa   :  { %v6_v2 = vld [vmem:[#allocation1] sm:$0x1]   ;;  %10 = vrot.lane.b32.xlu0 %v9_v1, %s22_s0 }
   0xb   :  { %8 = vst.msk [vmem:[#allocation0] sm:$0x1] %vm7_vm0, %v6_v2  }
  0x7c   :  { %v11_v3 = vpop.permute.xlu0 %10  }
  0x7d   :  { %14 = vst.msk [vmem:[#allocation0 + $0x1] sm:$0x1] %vm7_vm0, %v11_v3  }
  0x84   :  { %v18_v4 = vld [vmem:[#allocation0] sm:$0x3] }
  0x85   :  { %20 = vst [vmem:[%s40_s1] sm:$0x3] %v18_v4 }

// kernel: tile.25
= control target key start
LH: loop header
LB: loop body
LE: loop exit
PB: predicated region body
PF: predicated region fallthrough
CT: control target
= control target key end

     0   :  { %s22_s0 = inlined_call_operand.vmem [shape: f32[64], index: 0, kind: input, shape index: {}]   ;;  %s23_s1 = inlined_call_operand.vmem [shape: f32[2,64], index: 1, kind: output, shape index: {}]  }
   0x1   :  { %v4_v0 = vld [vmem:[%s22_s0] ss:$0 sm:$0xff] }
   0x2   :  { %5 = vst [vmem:[%s23_s1] sm:$0x3] %v4_v0 }

// kernel: tile.26
= control target key start
LH: loop header
LB: loop body
LE: loop exit
PB: predicated region body
PF: predicated region fallthrough
CT: control target
= control target key end

     0   :  { %vm7_vm0 = vcmask 523264   ;;  %vm13_vm1 = vcmask 1048064   ;;  %s39_s0 = inlined_call_operand.vmem [shape: f32[2,64], index: 0, kind: input, shape index: {}]   ;;  %s40_s1 = inlined_call_operand.vmem [shape: f32[1,128], index: 1, kind: output, shape index: {}]  }
   0x1   :  { %v4_v0 = vld [vmem:[%s39_s0] sm:$0x3]  ;;  %s22_s0 = smov 64  }
   0x2   :  { %5 = vst [vmem:[#allocation1] sm:$0x3] %v4_v0 }
   0x9   :  { %v10_v1 = vld [vmem:[#allocation1 + $0x1] sm:$0x1]   ;;  %v6_v2 = vld [vmem:[#allocation1] sm:$0x1]  }
   0xa   :  { %11 = vrot.lane.b32.xlu0 %v10_v1, %s22_s0  ;;  %8 = vst.msk [vmem:[#allocation0] sm:$0x1] %vm7_vm0, %v6_v2  }
  0x7c   :  { %v12_v3 = vpop.permute.xlu0 %11  }
  0x7d   :  { %14 = vst.msk [vmem:[#allocation0] sm:$0x1] %vm13_vm1, %v12_v3  }
  0x84   :  { %v18_v4 = vld [vmem:[#allocation0] sm:$0x1] }
  0x85   :  { %20 = vst [vmem:[%s40_s1] sm:$0x1] %v18_v4 }

// kernel: feature_map_convolution.7
= control target key start
LH: loop header
LB: loop body
LE: loop exit
PB: predicated region body
PF: predicated region fallthrough
CT: control target
= control target key end

     0   :  { %vm71_vm0 = vcmask 441344   ;;  %vm84_vm1 = vcmask 1042432   ;;  %s414_s1 = inlined_call_operand.vmem [shape: bf16[54,128], index: 1, kind: input, shape index: {}]   ;;  %s415_s0 = inlined_call_operand.vmem [shape: bf16[64,54], index: 0, kind: input, shape index: {}]   ;;  %s416_s2 = inlined_call_operand.vmem [shape: bf16[64,128], index: 2, kind: output, shape index: {0}]   ;;  %s417_s3 = inlined_call_operand.vmem [shape: f32[1,1,128], index: 3, kind: output, shape index: {1}]   ;;  %s418_s4 = inlined_call_operand.vmem [shape: f32[1,1,128], index: 4, kind: output, shape index: {2}]  }
   0x1   :  { %v335_v0 = vld [vmem:[%s414_s1] sm:$0xff]   ;;  %v336_v1 = vld [vmem:[%s414_s1 + $0x8] sm:$0xff]   ;;  %v337_v2 = vld [vmem:[%s414_s1 + $0x10] sm:$0xff]  }
   0x2   :  { %309 = vmatprep.subr.bf16.mxu0 %v335_v0  ;;  %325 = vmatprep.subr.bf16.mxu1 %v335_v0  ;;  %v339_v3 = vld [vmem:[%s415_s0] sm:$0xff]   ;;  %v341_v4 = vld [vmem:[%s415_s0 + $0x10] sm:$0xff]   ;;  %v338_v5 = vld [vmem:[%s414_s1 + $0x18] ss:$0 sps:$4 sm:$0x77]  }
   0x3   :  { %310 = vmatpush3.bf16.msra.mxu0 %v335_v0  ;;  %329 = vmatpush3.bf16.msra.mxu1 %v335_v0  ;;  %v86_v6 = vsel %vm84_vm1, %v338_v5, 0  ;;  %v340_v7 = vld [vmem:[%s415_s0 + $0x8] sm:$0xff]   ;;  %v342_v8 = vld [vmem:[%s415_s0 + $0x18] sm:$0xff]  }
   0x4   :  { %311 = vmatprep.subr.bf16.mxu0 %v336_v1  ;;  %326 = vmatprep.subr.bf16.mxu1 %v336_v1 }
   0x5   :  { %317 = vmatprep.mubr.msk.bf16.mxu0 %vm71_vm0, %v339_v3  ;;  %321 = vmatprep.mubr.msk.bf16.mxu1 %vm71_vm0, %v341_v4 }
   0x7   :  { %312 = vmatpush3.bf16.msra.mxu0 %v336_v1  ;;  %330 = vmatpush3.bf16.msra.mxu1 %v336_v1 }
   0x8   :  { %313 = vmatprep.subr.bf16.mxu0 %v337_v2  ;;  %327 = vmatprep.subr.bf16.mxu1 %v337_v2 }
   0xb   :  { %314 = vmatpush3.bf16.msra.mxu0 %v337_v2  ;;  %331 = vmatpush3.bf16.msra.mxu1 %v337_v2 }
   0xc   :  { %333 = vmatprep.subr.msk.bf16.mxu0 %vm84_vm1, %v338_v5  ;;  %334 = vmatprep.subr.msk.bf16.mxu1 %vm84_vm1, %v338_v5 }
   0xf   :  { %316 = vmatpush3.bf16.msra.mxu0 %v86_v6  ;;  %332 = vmatpush3.bf16.msra.mxu1 %v86_v6 }
  0x12   :  { %318 = vmatmul.mubr.msk.bf16.vlgmr.msra.gmra.mrb[0].mxu0 %vm71_vm0, %v340_v7  ;;  %322 = vmatmul.mubr.msk.bf16.vlgmr.msra.gmra.mrb[0].mxu1 %vm71_vm0, %v342_v8 }
  0xe5   :  { %v319_v9 = vpop.f32.mrb[0].mxu0  ;;  %v323_v10 = vpop.f32.mrb[0].mxu1 }
  0xe6   :  { %v122_v11 = vpop.f32.mrb[1].mxu0  ;;  %v138_v12 = vpop.f32.mrb[1].mxu1 }
  0xe7   :  { %v320_v13 = vpop.f32.mrb[2].mxu0  ;;  %v324_v14 = vpop.f32.mrb[2].mxu1 }
  0xe8   :  { %v286_v15 = vpack.c.bf16 %v320_v13, %v319_v9  ;;  %v125_v16 = vpop.f32.mrb[3].mxu0  ;;  %v296_v17 = vpack.c.bf16 %v324_v14, %v323_v10  ;;  %v141_v18 = vpop.f32.mrb[3].mxu1 }
  0xe9   :  { %v281_v19 = vpack.c.bf16 %v125_v16, %v122_v11  ;;  %v193_v20 = vadd.f32 %v125_v16, %v122_v11  ;;  %v291_v21 = vpack.c.bf16 %v141_v18, %v138_v12 }
  0xea   :  { %298 = vst [vmem:[%s416_s2 + $0x8] sm:$0xff] %v286_v15   ;;  %300 = vst [vmem:[%s416_s2 + $0x18] sm:$0xff] %v296_v17  }
  0xeb   :  { %282 = vst [vmem:[%s416_s2] sm:$0xff] %v281_v19   ;;  %v194_v22 = vadd.f32 %v319_v9, %v193_v20  ;;  %299 = vst [vmem:[%s416_s2 + $0x10] sm:$0xff] %v291_v21  }
  0xed   :  { %v195_v23 = vadd.f32 %v320_v13, %v194_v22 }
  0xef   :  { %v196_v24 = vadd.f32 %v195_v23, %v138_v12 }
  0xf1   :  { %v197_v25 = vadd.f32 %v196_v24, %v141_v18 }
  0xf3   :  { %v198_v26 = vadd.f32 %v323_v10, %v197_v25 }
  0xf5   :  { %v199_v27 = vadd.f32 %v324_v14, %v198_v26 }
  0xf7   :  { %v200_v28 = vrot.slane %v199_v27, 4 }
  0xf9   :  { %v201_v29 = vadd.f32 %v200_v28, %v199_v27 }
  0xfb   :  { %v202_v30 = vrot.slane %v201_v29, 2 }
  0xfd   :  { %v203_v31 = vadd.f32 %v202_v30, %v201_v29 }
  0xff   :  { %v204_v32 = vrot.slane %v203_v31, 1 }
 0x101   :  { %v205_v33 = vadd.f32 %v204_v32, %v203_v31 }
 0x103   :  { %v206_v34 = vmul.f32 0.015625, %v205_v33  ;;  %236 = vst [vmem:[%s417_s3] sm:$0x1] %v205_v33 }
 0x105   :  { %v207_v35 = vsub.f32 %v122_v11, %v206_v34  ;;  %v208_v36 = vsub.f32 %v125_v16, %v206_v34  ;;  %v209_v37 = vsub.f32 %v319_v9, %v206_v34  ;;  %v210_v38 = vsub.f32 %v320_v13, %v206_v34 }
 0x106   :  { %v211_v39 = vsub.f32 %v138_v12, %v206_v34  ;;  %v212_v40 = vsub.f32 %v141_v18, %v206_v34  ;;  %v213_v41 = vsub.f32 %v323_v10, %v206_v34  ;;  %v214_v42 = vsub.f32 %v324_v14, %v206_v34 }
 0x107   :  { %v215_v43 = vmul.f32 %v207_v35, %v207_v35  ;;  %v216_v44 = vmul.f32 %v208_v36, %v208_v36  ;;  %v217_v45 = vmul.f32 %v209_v37, %v209_v37  ;;  %v218_v47 = vmul.f32 %v210_v38, %v210_v38 }
 0x108   :  { %v219_v49 = vmul.f32 %v211_v39, %v211_v39  ;;  %v220_v51 = vmul.f32 %v212_v40, %v212_v40  ;;  %v221_v53 = vmul.f32 %v213_v41, %v213_v41  ;;  %v222_v55 = vmul.f32 %v214_v42, %v214_v42 }
 0x109   :  { %v223_v46 = vadd.f32 %v216_v44, %v215_v43 }
 0x10b   :  { %v224_v48 = vadd.f32 %v223_v46, %v217_v45 }
 0x10d   :  { %v225_v50 = vadd.f32 %v224_v48, %v218_v47 }
 0x10f   :  { %v226_v52 = vadd.f32 %v225_v50, %v219_v49 }
 0x111   :  { %v227_v54 = vadd.f32 %v226_v52, %v220_v51 }
 0x113   :  { %v228_v56 = vadd.f32 %v227_v54, %v221_v53 }
 0x115   :  { %v229_v57 = vadd.f32 %v228_v56, %v222_v55 }
 0x117   :  { %v230_v58 = vrot.slane %v229_v57, 4 }
 0x119   :  { %v231_v59 = vadd.f32 %v230_v58, %v229_v57 }
 0x11b   :  { %v232_v60 = vrot.slane %v231_v59, 2 }
 0x11d   :  { %v233_v61 = vadd.f32 %v232_v60, %v231_v59 }
 0x11f   :  { %v234_v62 = vrot.slane %v233_v61, 1 }
 0x121   :  { %v235_v63 = vadd.f32 %v234_v62, %v233_v61 }
 0x123   :  { %237 = vst [vmem:[%s418_s4] sm:$0x1] %v235_v63 }

// kernel: feature_map_convolution.8
= control target key start
LH: loop header
LB: loop body
LE: loop exit
PB: predicated region body
PF: predicated region fallthrough
CT: control target
= control target key end

     0   :  { %s222_s0 = inlined_call_operand.vmem [shape: bf16[64,128], index: 0, kind: input, shape index: {}]   ;;  %s223_s1 = inlined_call_operand.vmem [shape: f32[1,128], index: 1, kind: input, shape index: {}]   ;;  %s224_s2 = inlined_call_operand.vmem [shape: f32[1,128], index: 2, kind: input, shape index: {}]   ;;  %s225_s3 = inlined_call_operand.vmem [shape: bf16[64,128], index: 3, kind: output, shape index: {}]  }
   0x1   :  { %v131_v0 = vld [vmem:[%s222_s0] sm:$0xff]   ;;  %v166_v4 = vld [vmem:[%s222_s0 + $0x8] sm:$0xff]   ;;  %v167_v5 = vld [vmem:[%s222_s0 + $0x10] sm:$0xff]  }
   0x2   :  { %v112_v1 = vld [vmem:[%s223_s1] ss:$0 sm:$0xff]  ;;  %v132_v2 = vunpack.c.l.bf16 %v131_v0  ;;  %v133_v3 = vunpack.c.h.bf16 %v131_v0  ;;  %v168_v6 = vld [vmem:[%s222_s0 + $0x18] sm:$0xff]   ;;  %v136_v8 = vunpack.c.l.bf16 %v166_v4  ;;  %v137_v9 = vunpack.c.h.bf16 %v166_v4 }
   0x3   :  { %v113_v7 = vld [vmem:[%s224_s2] ss:$0 sm:$0xff]  ;;  %v140_v10 = vunpack.c.l.bf16 %v167_v5  ;;  %v141_v11 = vunpack.c.h.bf16 %v167_v5  ;;  %v144_v14 = vunpack.c.l.bf16 %v168_v6  ;;  %v145_v15 = vunpack.c.h.bf16 %v168_v6 }
   0x4   :  { %v37_v12 = vmul.f32 %v132_v2, %v112_v1  ;;  %v38_v13 = vmul.f32 %v133_v3, %v112_v1  ;;  %v39_v16 = vmul.f32 %v136_v8, %v112_v1  ;;  %v40_v17 = vmul.f32 %v137_v9, %v112_v1 }
   0x5   :  { %v41_v18 = vmul.f32 %v140_v10, %v112_v1  ;;  %v42_v19 = vmul.f32 %v141_v11, %v112_v1  ;;  %v43_v22 = vmul.f32 %v144_v14, %v112_v1  ;;  %v44_v23 = vmul.f32 %v145_v15, %v112_v1 }
   0x6   :  { %v52_v20 = vadd.f32 %v113_v7, %v37_v12  ;;  %v53_v21 = vadd.f32 %v113_v7, %v38_v13  ;;  %v54_v24 = vadd.f32 %v113_v7, %v39_v16  ;;  %v55_v25 = vadd.f32 %v113_v7, %v40_v17 }
   0x7   :  { %v56_v26 = vadd.f32 %v113_v7, %v41_v18  ;;  %v57_v27 = vadd.f32 %v113_v7, %v42_v19  ;;  %v58_v30 = vadd.f32 %v113_v7, %v43_v22  ;;  %v59_v31 = vadd.f32 %v113_v7, %v44_v23 }
   0x8   :  { %v60_v28 = vmax.f32 %v52_v20, 0.0  ;;  %v61_v29 = vmax.f32 %v53_v21, 0.0  ;;  %v62_v32 = vmax.f32 %v54_v24, 0.0  ;;  %v63_v33 = vmax.f32 %v55_v25, 0.0 }
   0x9   :  { %v64_v34 = vmax.f32 %v56_v26, 0.0  ;;  %v65_v35 = vmax.f32 %v57_v27, 0.0  ;;  %v66_v37 = vmax.f32 %v58_v30, 0.0  ;;  %v67_v38 = vmax.f32 %v59_v31, 0.0 }
   0xa   :  { %v149_v36 = vpack.c.bf16 %v61_v29, %v60_v28  ;;  %v154_v39 = vpack.c.bf16 %v63_v33, %v62_v32 }
   0xb   :  { %v159_v40 = vpack.c.bf16 %v65_v35, %v64_v34  ;;  %v164_v41 = vpack.c.bf16 %v67_v38, %v66_v37 }
   0xc   :  { %150 = vst [vmem:[%s225_s3] sm:$0xff] %v149_v36   ;;  %169 = vst [vmem:[%s225_s3 + $0x8] sm:$0xff] %v154_v39  }
   0xd   :  { %170 = vst [vmem:[%s225_s3 + $0x10] sm:$0xff] %v159_v40   ;;  %171 = vst [vmem:[%s225_s3 + $0x18] sm:$0xff] %v164_v41  }

// kernel: feature_map_convolution.9
= control target key start
LH: loop header
LB: loop body
LE: loop exit
PB: predicated region body
PF: predicated region fallthrough
CT: control target
= control target key end

     0   :  { %s2087_s1 = inlined_call_operand.vmem [shape: bf16[1152,128], index: 1, kind: input, shape index: {}]   ;;  %s2088_s0 = inlined_call_operand.vmem [shape: bf16[64,1152], index: 0, kind: input, shape index: {}]   ;;  %s2089_s2 = inlined_call_operand.vmem [shape: bf16[64,128], index: 2, kind: output, shape index: {0}]   ;;  %s2090_s3 = inlined_call_operand.vmem [shape: f32[1,1,128], index: 3, kind: output, shape index: {1}]   ;;  %s2091_s4 = inlined_call_operand.vmem [shape: f32[1,1,128], index: 4, kind: output, shape index: {2}]  }
   0x1   :  { %v1596_v0 = vld [vmem:[%s2087_s1 + $0x40] sm:$0xff]   ;;  %v1600_v4 = vld [vmem:[%s2087_s1 + $0x48] sm:$0xff]   ;;  %v1604_v8 = vld [vmem:[%s2087_s1 + $0x50] sm:$0xff]  }
   0x2   :  { %v1597_v1 = vld [vmem:[%s2087_s1 + $0xc0] sm:$0xff]   ;;  %1384 = vmatprep.subr.bf16.mxu0 %v1596_v0  ;;  %v1601_v5 = vld [vmem:[%s2087_s1 + $0xc8] sm:$0xff]   ;;  %v1605_v9 = vld [vmem:[%s2087_s1 + $0xd0] sm:$0xff]  }
   0x3   :  { %v1598_v2 = vld [vmem:[%s2087_s1] sm:$0xff]   ;;  %1424 = vmatprep.subr.bf16.mxu1 %v1597_v1  ;;  %v1602_v6 = vld [vmem:[%s2087_s1 + $0x8] sm:$0xff]   ;;  %v1606_v10 = vld [vmem:[%s2087_s1 + $0x10] sm:$0xff]  }
   0x4   :  { %v1599_v3 = vld [vmem:[%s2087_s1 + $0x80] sm:$0xff]   ;;  %1385 = vmatpush3.bf16.msra.mxu0 %v1598_v2  ;;  %v1603_v7 = vld [vmem:[%s2087_s1 + $0x88] sm:$0xff]   ;;  %v1607_v11 = vld [vmem:[%s2087_s1 + $0x90] sm:$0xff]  }
   0x5   :  { %1425 = vmatpush3.bf16.msra.mxu1 %v1599_v3  ;;  %1386 = vmatprep.subr.bf16.mxu0 %v1600_v4  ;;  %v1608_v12 = vld [vmem:[%s2087_s1 + $0x58] sm:$0xff]   ;;  %v1612_v16 = vld [vmem:[%s2087_s1 + $0x60] sm:$0xff]   ;;  %v1616_v20 = vld [vmem:[%s2087_s1 + $0x68] sm:$0xff]  }
   0x6   :  { %1426 = vmatprep.subr.bf16.mxu1 %v1601_v5  ;;  %v1609_v13 = vld [vmem:[%s2087_s1 + $0xd8] sm:$0xff]   ;;  %v1613_v17 = vld [vmem:[%s2087_s1 + $0xe0] sm:$0xff]   ;;  %v1617_v21 = vld [vmem:[%s2087_s1 + $0xe8] sm:$0xff]  }
   0x7   :  { %v1610_v14 = vld [vmem:[%s2087_s1 + $0x18] sm:$0xff]   ;;  %v1614_v18 = vld [vmem:[%s2087_s1 + $0x20] sm:$0xff]   ;;  %v1618_v22 = vld [vmem:[%s2087_s1 + $0x28] sm:$0xff]  }
   0x8   :  { %1387 = vmatpush3.bf16.msra.mxu0 %v1602_v6  ;;  %v1611_v15 = vld [vmem:[%s2087_s1 + $0x98] sm:$0xff]   ;;  %v1615_v19 = vld [vmem:[%s2087_s1 + $0xa0] sm:$0xff]   ;;  %v1619_v23 = vld [vmem:[%s2087_s1 + $0xa8] sm:$0xff]  }
   0x9   :  { %1427 = vmatpush3.bf16.msra.mxu1 %v1603_v7  ;;  %1388 = vmatprep.subr.bf16.mxu0 %v1604_v8  ;;  %v1620_v24 = vld [vmem:[%s2087_s1 + $0x70] sm:$0xff]   ;;  %v1624_v28 = vld [vmem:[%s2087_s1 + $0x78] sm:$0xff]   ;;  %v1628_v32 = vld [vmem:[%s2088_s0] ss:$36 sps:$4 sm:$0xff]  }
   0xa   :  { %1428 = vmatprep.subr.bf16.mxu1 %v1605_v9  ;;  %v1621_v25 = vld [vmem:[%s2087_s1 + $0xf0] sm:$0xff]   ;;  %v1625_v29 = vld [vmem:[%s2087_s1 + $0xf8] sm:$0xff]   ;;  %v1630_v33 = vld [vmem:[%s2088_s0 + $0x4] ss:$36 sps:$4 sm:$0xff]  }
   0xb   :  { %v1622_v26 = vld [vmem:[%s2087_s1 + $0x30] sm:$0xff]   ;;  %v1626_v30 = vld [vmem:[%s2087_s1 + $0x38] sm:$0xff]   ;;  %v1631_v34 = vld [vmem:[%s2088_s0 + $0x8] ss:$36 sps:$4 sm:$0xff]   ;;  %847 = vmatprep.mubr.bf16.mxu0 %v1630_v33 }
   0xc   :  { %1389 = vmatpush3.bf16.msra.mxu0 %v1606_v10  ;;  %v1623_v27 = vld [vmem:[%s2087_s1 + $0xb0] sm:$0xff]   ;;  %v1627_v31 = vld [vmem:[%s2087_s1 + $0xb8] sm:$0xff]   ;;  %v1634_v36 = vld [vmem:[%s2087_s1 + $0x140] sm:$0xff]  }
   0xd   :  { %1429 = vmatpush3.bf16.msra.mxu1 %v1607_v11  ;;  %1390 = vmatprep.subr.bf16.mxu0 %v1608_v12  ;;  %v1633_v35 = vld [vmem:[%s2088_s0 + $0xc] ss:$36 sps:$4 sm:$0xff]   ;;  %v1635_v37 = vld [vmem:[%s2087_s1 + $0x1c0] sm:$0xff]   ;;  %v1644_v45 = vld [vmem:[%s2088_s0 + $0x54] ss:$36 sps:$4 sm:$0xff]  }
   0xe   :  { %1430 = vmatprep.subr.bf16.mxu1 %v1609_v13  ;;  %912 = vmatprep.mubr.bf16.mxu1 %v1633_v35  ;;  %v1636_v38 = vld [vmem:[%s2087_s1 + $0x100] sm:$0xff]   ;;  %v1638_v40 = vld [vmem:[%s2087_s1 + $0x148] sm:$0xff]   ;;  %v1647_v47 = vld [vmem:[%s2088_s0 + $0x50] ss:$36 sps:$4 sm:$0xff]  }
   0xf   :  { %v1637_v39 = vld [vmem:[%s2087_s1 + $0x180] sm:$0xff]   ;;  %v1639_v41 = vld [vmem:[%s2087_s1 + $0x1c8] sm:$0xff]   ;;  %v1648_v48 = vld [vmem:[%s2087_s1 + $0x150] sm:$0xff]  }
  0x10   :  { %1391 = vmatpush3.bf16.msra.mxu0 %v1610_v14  ;;  %v1640_v42 = vld [vmem:[%s2087_s1 + $0x108] sm:$0xff]   ;;  %v1649_v49 = vld [vmem:[%s2087_s1 + $0x1d0] sm:$0xff]   ;;  %v1652_v52 = vld [vmem:[%s2087_s1 + $0x158] sm:$0xff]  }
  0x11   :  { %1431 = vmatpush3.bf16.msra.mxu1 %v1611_v15  ;;  %1392 = vmatprep.subr.bf16.mxu0 %v1612_v16  ;;  %v1641_v43 = vld [vmem:[%s2087_s1 + $0x188] sm:$0xff]   ;;  %v1650_v50 = vld [vmem:[%s2087_s1 + $0x110] sm:$0xff]   ;;  %v1653_v53 = vld [vmem:[%s2087_s1 + $0x1d8] sm:$0xff]  }
  0x12   :  { %1432 = vmatprep.subr.bf16.mxu1 %v1613_v17  ;;  %v1642_v44 = vld [vmem:[%s2088_s0 + $0x4c] ss:$36 sps:$4 sm:$0xff]   ;;  %v1654_v54 = vld [vmem:[%s2087_s1 + $0x118] sm:$0xff]   ;;  %v1662_v60 = vld [vmem:[%s2087_s1 + $0x160] sm:$0xff]  }
  0x13   :  { %v1646_v46 = vld [vmem:[%s2088_s0 + $0x48] ss:$36 sps:$4 sm:$0xff]   ;;  %v1651_v51 = vld [vmem:[%s2087_s1 + $0x190] sm:$0xff]   ;;  %v1655_v55 = vld [vmem:[%s2087_s1 + $0x198] sm:$0xff]  }
  0x14   :  { %1393 = vmatpush3.bf16.msra.mxu0 %v1614_v18  ;;  %v1656_v56 = vld [vmem:[%s2088_s0 + $0x94] ss:$36 sps:$4 sm:$0xff]   ;;  %v1658_v57 = vld [vmem:[%s2088_s0 + $0x9c] ss:$36 sps:$4 sm:$0xff]   ;;  %v1666_v0 = vld [vmem:[%s2087_s1 + $0x168] sm:$0xff]  }
  0x15   :  { %1433 = vmatpush3.bf16.msra.mxu1 %v1615_v19  ;;  %1394 = vmatprep.subr.bf16.mxu0 %v1616_v20  ;;  %v1660_v58 = vld [vmem:[%s2088_s0 + $0x90] ss:$36 sps:$4 sm:$0xff]   ;;  %v1661_v59 = vld [vmem:[%s2088_s0 + $0x98] ss:$36 sps:$4 sm:$0xff]   ;;  %v1663_v61 = vld [vmem:[%s2087_s1 + $0x1e0] sm:$0xff]  }
  0x16   :  { %1434 = vmatprep.subr.bf16.mxu1 %v1617_v21  ;;  %v1664_v62 = vld [vmem:[%s2087_s1 + $0x120] sm:$0xff]   ;;  %v1667_v1 = vld [vmem:[%s2087_s1 + $0x1e8] sm:$0xff]   ;;  %v1674_v6 = vld [vmem:[%s2088_s0 + $0xd8] ss:$36 sps:$4 sm:$0xff]  }
  0x17   :  { %v1665_v63 = vld [vmem:[%s2087_s1 + $0x1a0] sm:$0xff]   ;;  %v1668_v2 = vld [vmem:[%s2087_s1 + $0x128] sm:$0xff]   ;;  %v1676_v8 = vld [vmem:[%s2087_s1 + $0x170] sm:$0xff]  }
  0x18   :  { %1395 = vmatpush3.bf16.msra.mxu0 %v1618_v22  ;;  %v1669_v3 = vld [vmem:[%s2087_s1 + $0x1a8] sm:$0xff]   ;;  %v1670_v4 = vld [vmem:[%s2088_s0 + $0xdc] ss:$36 sps:$4 sm:$0xff]   ;;  %v1677_v9 = vld [vmem:[%s2087_s1 + $0x1f0] sm:$0xff]  }
  0x19   :  { %1435 = vmatpush3.bf16.msra.mxu1 %v1619_v23  ;;  %1396 = vmatprep.subr.bf16.mxu0 %v1620_v24  ;;  %v1672_v5 = vld [vmem:[%s2088_s0 + $0xe4] ss:$36 sps:$4 sm:$0xff]   ;;  %v1678_v10 = vld [vmem:[%s2087_s1 + $0x130] sm:$0xff]   ;;  %v1680_v12 = vld [vmem:[%s2087_s1 + $0x178] sm:$0xff]  }
  0x1a   :  { %1436 = vmatprep.subr.bf16.mxu1 %v1621_v25  ;;  %v1675_v7 = vld [vmem:[%s2088_s0 + $0xe0] ss:$36 sps:$4 sm:$0xff]   ;;  %v1679_v11 = vld [vmem:[%s2087_s1 + $0x1b0] sm:$0xff]   ;;  %v1681_v13 = vld [vmem:[%s2087_s1 + $0x1f8] sm:$0xff]  }
  0x1b   :  { %v1682_v14 = vld [vmem:[%s2087_s1 + $0x138] sm:$0xff]   ;;  %v1684_v16 = vld [vmem:[%s2088_s0 + $0x10] ss:$36 sps:$4 sm:$0xff]   ;;  %v1690_v20 = vld [vmem:[%s2087_s1 + $0x200] sm:$0xff]  }
  0x1c   :  { %1397 = vmatpush3.bf16.msra.mxu0 %v1622_v26  ;;  %v1683_v15 = vld [vmem:[%s2087_s1 + $0x1b8] sm:$0xff]   ;;  %v1691_v21 = vld [vmem:[%s2087_s1 + $0x208] sm:$0xff]   ;;  %v1697_v25 = vld [vmem:[%s2088_s0 + $0x60] ss:$36 sps:$4 sm:$0xff]  }
  0x1d   :  { %1437 = vmatpush3.bf16.msra.mxu1 %v1623_v27  ;;  %1398 = vmatprep.subr.bf16.mxu0 %v1624_v28  ;;  %v1686_v17 = vld [vmem:[%s2088_s0 + $0x14] ss:$36 sps:$4 sm:$0xff]   ;;  %v1689_v19 = vld [vmem:[%s2088_s0 + $0x1c] ss:$36 sps:$4 sm:$0xff]   ;;  %v1694_v23 = vld [vmem:[%s2088_s0 + $0x64] ss:$36 sps:$4 sm:$0xff]  }
  0x1e   :  { %1438 = vmatprep.subr.bf16.mxu1 %v1625_v29  ;;  %v1687_v18 = vld [vmem:[%s2088_s0 + $0x18] ss:$36 sps:$4 sm:$0xff]   ;;  %v1698_v26 = vld [vmem:[%s2087_s1 + $0x210] sm:$0xff]   ;;  %v1700_v27 = vld [vmem:[%s2088_s0 + $0xa4] ss:$36 sps:$4 sm:$0xff]  }
  0x1f   :  { %v1692_v22 = vld [vmem:[%s2088_s0 + $0x5c] ss:$36 sps:$4 sm:$0xff]   ;;  %v1702_v28 = vld [vmem:[%s2088_s0 + $0xac] ss:$36 sps:$4 sm:$0xff]  }
  0x20   :  { %1399 = vmatpush3.bf16.msra.mxu0 %v1626_v30  ;;  %v1696_v24 = vld [vmem:[%s2088_s0 + $0x58] ss:$36 sps:$4 sm:$0xff]   ;;  %v1704_v30 = vld [vmem:[%s2088_s0 + $0xa0] ss:$36 sps:$4 sm:$0xff]   ;;  %v1708_v33 = vld [vmem:[%s2088_s0 + $0xec] ss:$36 sps:$4 sm:$0xff]  }
  0x21   :  { %1439 = vmatpush3.bf16.msra.mxu1 %v1627_v31  ;;  %1464 = vmatprep.subr.bf16.mxu0 %v1634_v36  ;;  %v1699_v29 = vld [vmem:[%s2087_s1 + $0x218] sm:$0xff]   ;;  %v1705_v31 = vld [vmem:[%s2088_s0 + $0xa8] ss:$36 sps:$4 sm:$0xff]  }
  0x22   :  { %1504 = vmatprep.subr.bf16.mxu1 %v1635_v37  ;;  %v1707_v35 = vld [vmem:[%s2087_s1 + $0x228] sm:$0xff]   ;;  %v1714_v37 = vld [vmem:[%s2087_s1 + $0x230] sm:$0xff]  }
  0x23   :  { %848 = vmatmul.mubr.bf16.vlgmr.msra.gmra.mrb[0].mxu0 %v1628_v32  ;;  %v1706_v32 = vld [vmem:[%s2087_s1 + $0x220] sm:$0xff]   ;;  %v1712_v36 = vld [vmem:[%s2088_s0 + $0xe8] ss:$36 sps:$4 sm:$0xff]  }
  0x24   :  { %913 = vmatmul.mubr.bf16.vlgmr.msra.gmra.mrb[0].mxu1 %v1631_v34  ;;  %1465 = vmatpush3.bf16.msra.mxu0 %v1636_v38  ;;  %v1710_v34 = vld [vmem:[%s2088_s0 + $0xf4] ss:$36 sps:$4 sm:$0xff]  }
  0x25   :  { %1505 = vmatpush3.bf16.msra.mxu1 %v1637_v39  ;;  %1466 = vmatprep.subr.bf16.mxu0 %v1638_v40  ;;  %v1713_v38 = vld [vmem:[%s2088_s0 + $0xf0] ss:$36 sps:$4 sm:$0xff]   ;;  %v1716_v39 = vld [vmem:[%s2088_s0 + $0x20] ss:$36 sps:$4 sm:$0xff]  }
  0x26   :  { %1506 = vmatprep.subr.bf16.mxu1 %v1639_v41  ;;  %855 = vmatprep.mubr.bf16.mxu0 %v1642_v44  ;;  %v1717_v40 = vld [vmem:[%s2088_s0 + $0xb0] ss:$36 sps:$4 sm:$0xff]   ;;  %v1715_v41 = vld [vmem:[%s2087_s1 + $0x238] sm:$0xff]  }
  0x27   :  { %920 = vmatprep.mubr.bf16.mxu1 %v1644_v45 }
  0x28   :  { %1467 = vmatpush3.bf16.msra.mxu0 %v1640_v42  ;;  %v1718_v42 = vld [vmem:[%s2088_s0 + $0x68] ss:$36 sps:$4 sm:$0xff]  }
  0x29   :  { %1507 = vmatpush3.bf16.msra.mxu1 %v1641_v43  ;;  %1468 = vmatprep.subr.bf16.mxu0 %v1648_v48  ;;  %v1719_v43 = vld [vmem:[%s2088_s0 + $0xf8] ss:$36 sps:$4 sm:$0xff]  }
  0x2a   :  { %1508 = vmatprep.subr.bf16.mxu1 %v1649_v49 }
  0x2b   :  { %856 = vmatmul.mubr.bf16.gmra.mrb[4].mxu0 %v1646_v46 }
  0x2c   :  { %921 = vmatmul.mubr.bf16.gmra.mrb[4].mxu1 %v1647_v47  ;;  %1469 = vmatpush3.bf16.msra.mxu0 %v1650_v50 }
  0x2d   :  { %1509 = vmatpush3.bf16.msra.mxu1 %v1651_v51  ;;  %1470 = vmatprep.subr.bf16.mxu0 %v1652_v52 }
  0x2e   :  { %1510 = vmatprep.subr.bf16.mxu1 %v1653_v53  ;;  %863 = vmatprep.mubr.bf16.mxu0 %v1656_v56 }
  0x2f   :  { %928 = vmatprep.mubr.bf16.mxu1 %v1658_v57 }
  0x30   :  { %1471 = vmatpush3.bf16.msra.mxu0 %v1654_v54 }
  0x31   :  { %1511 = vmatpush3.bf16.msra.mxu1 %v1655_v55  ;;  %1472 = vmatprep.subr.bf16.mxu0 %v1662_v60 }
  0x32   :  { %1512 = vmatprep.subr.bf16.mxu1 %v1663_v61 }
  0x33   :  { %864 = vmatmul.mubr.bf16.gmra.mrb[8].mxu0 %v1660_v58 }
  0x34   :  { %929 = vmatmul.mubr.bf16.gmra.mrb[8].mxu1 %v1661_v59  ;;  %1473 = vmatpush3.bf16.msra.mxu0 %v1664_v62 }
  0x35   :  { %1513 = vmatpush3.bf16.msra.mxu1 %v1665_v63  ;;  %1474 = vmatprep.subr.bf16.mxu0 %v1666_v0 }
  0x36   :  { %1514 = vmatprep.subr.bf16.mxu1 %v1667_v1  ;;  %871 = vmatprep.mubr.bf16.mxu0 %v1670_v4 }
  0x37   :  { %936 = vmatprep.mubr.bf16.mxu1 %v1672_v5 }
  0x38   :  { %1475 = vmatpush3.bf16.msra.mxu0 %v1668_v2 }
  0x39   :  { %1515 = vmatpush3.bf16.msra.mxu1 %v1669_v3  ;;  %1476 = vmatprep.subr.bf16.mxu0 %v1676_v8 }
  0x3a   :  { %1516 = vmatprep.subr.bf16.mxu1 %v1677_v9 }
  0x3b   :  { %872 = vmatmul.mubr.bf16.gmra.mrb[12].mxu0 %v1674_v6 }
  0x3c   :  { %937 = vmatmul.mubr.bf16.gmra.mrb[12].mxu1 %v1675_v7  ;;  %1477 = vmatpush3.bf16.msra.mxu0 %v1678_v10 }
  0x3d   :  { %1517 = vmatpush3.bf16.msra.mxu1 %v1679_v11  ;;  %1478 = vmatprep.subr.bf16.mxu0 %v1680_v12 }
  0x3e   :  { %1518 = vmatprep.subr.bf16.mxu1 %v1681_v13  ;;  %977 = vmatprep.mubr.bf16.mxu0 %v1686_v17 }
  0x3f   :  { %1042 = vmatprep.mubr.bf16.mxu1 %v1689_v19 }
  0x40   :  { %1479 = vmatpush3.bf16.msra.mxu0 %v1682_v14 }
  0x41   :  { %1519 = vmatpush3.bf16.msra.mxu1 %v1683_v15  ;;  %1556 = vmatprep.subr.bf16.mxu0 %v1690_v20 }
  0x42   :  { %1580 = vmatprep.subr.bf16.mxu1 %v1690_v20 }
  0x43   :  { %978 = vmatmul.mubr.bf16.vlgmr.msra.gmra.mrb[16].mxu0 %v1684_v16 }
  0x44   :  { %1043 = vmatmul.mubr.bf16.vlgmr.msra.gmra.mrb[16].mxu1 %v1687_v18  ;;  %1557 = vmatpush3.bf16.msra.mxu0 %v1690_v20 }
  0x45   :  { %1588 = vmatpush3.bf16.msra.mxu1 %v1690_v20  ;;  %1558 = vmatprep.subr.bf16.mxu0 %v1691_v21 }
  0x46   :  { %1581 = vmatprep.subr.bf16.mxu1 %v1691_v21  ;;  %985 = vmatprep.mubr.bf16.mxu0 %v1692_v22 }
  0x47   :  { %1050 = vmatprep.mubr.bf16.mxu1 %v1694_v23 }
  0x48   :  { %1559 = vmatpush3.bf16.msra.mxu0 %v1691_v21 }
  0x49   :  { %1589 = vmatpush3.bf16.msra.mxu1 %v1691_v21  ;;  %1560 = vmatprep.subr.bf16.mxu0 %v1698_v26 }
  0x4a   :  { %1582 = vmatprep.subr.bf16.mxu1 %v1698_v26 }
  0x4b   :  { %986 = vmatmul.mubr.bf16.gmra.mrb[20].mxu0 %v1696_v24 }
  0x4c   :  { %1051 = vmatmul.mubr.bf16.gmra.mrb[20].mxu1 %v1697_v25  ;;  %993 = vmatprep.mubr.bf16.mxu0 %v1700_v27 }
  0x4d   :  { %1561 = vmatpush3.bf16.msra.mxu0 %v1698_v26  ;;  %1058 = vmatprep.mubr.bf16.mxu1 %v1702_v28 }
  0x4e   :  { %1590 = vmatpush3.bf16.msra.mxu1 %v1698_v26  ;;  %1562 = vmatprep.subr.bf16.mxu0 %v1699_v29 }
  0x4f   :  { %1583 = vmatprep.subr.bf16.mxu1 %v1699_v29 }
  0x51   :  { %1563 = vmatpush3.bf16.msra.mxu0 %v1699_v29 }
  0x52   :  { %1591 = vmatpush3.bf16.msra.mxu1 %v1699_v29  ;;  %1564 = vmatprep.subr.bf16.mxu0 %v1706_v32 }
  0x53   :  { %994 = vmatmul.mubr.bf16.gmra.mrb[24].mxu0 %v1704_v30  ;;  %1584 = vmatprep.subr.bf16.mxu1 %v1706_v32 }
  0x54   :  { %1059 = vmatmul.mubr.bf16.gmra.mrb[24].mxu1 %v1705_v31  ;;  %1001 = vmatprep.mubr.bf16.mxu0 %v1708_v33 }
  0x55   :  { %1565 = vmatpush3.bf16.msra.mxu0 %v1706_v32  ;;  %1066 = vmatprep.mubr.bf16.mxu1 %v1710_v34 }
  0x56   :  { %1592 = vmatpush3.bf16.msra.mxu1 %v1706_v32  ;;  %1566 = vmatprep.subr.bf16.mxu0 %v1707_v35 }
  0x57   :  { %1585 = vmatprep.subr.bf16.mxu1 %v1707_v35 }
  0x59   :  { %1567 = vmatpush3.bf16.msra.mxu0 %v1707_v35 }
  0x5a   :  { %1593 = vmatpush3.bf16.msra.mxu1 %v1707_v35  ;;  %1568 = vmatprep.subr.bf16.mxu0 %v1714_v37 }
  0x5b   :  { %1002 = vmatmul.mubr.bf16.gmra.mrb[28].mxu0 %v1712_v36  ;;  %1586 = vmatprep.subr.bf16.mxu1 %v1714_v37 }
  0x5c   :  { %1067 = vmatmul.mubr.bf16.gmra.mrb[28].mxu1 %v1713_v38  ;;  %1572 = vmatprep.mubr.bf16.mxu0 %v1716_v39 }
  0x5d   :  { %1569 = vmatpush3.bf16.msra.mxu0 %v1714_v37  ;;  %1576 = vmatprep.mubr.bf16.mxu1 %v1717_v40 }
  0x5e   :  { %1594 = vmatpush3.bf16.msra.mxu1 %v1714_v37  ;;  %1570 = vmatprep.subr.bf16.mxu0 %v1715_v41 }
  0x5f   :  { %1587 = vmatprep.subr.bf16.mxu1 %v1715_v41 }
  0x61   :  { %1571 = vmatpush3.bf16.msra.mxu0 %v1715_v41 }
  0x62   :  { %1595 = vmatpush3.bf16.msra.mxu1 %v1715_v41 }
  0x64   :  { %1573 = vmatmul.mubr.bf16.vlgmr.msra.gmra.mrb[32].mxu0 %v1718_v42 }
  0x65   :  { %1577 = vmatmul.mubr.bf16.vlgmr.msra.gmra.mrb[32].mxu1 %v1719_v43 }
  0xf6   :  { %v1400_v44 = vpop.f32.mrb[0].mxu0 }
  0xf7   :  { %v1440_v45 = vpop.f32.mrb[0].mxu1  ;;  %v1401_v46 = vpop.f32.mrb[1].mxu0 }
  0xf8   :  { %v1402_v47 = vadd.f32 %v1401_v46, %v1400_v44  ;;  %v1441_v48 = vpop.f32.mrb[1].mxu1  ;;  %v1403_v49 = vpop.f32.mrb[2].mxu0 }
  0xf9   :  { %v1442_v50 = vadd.f32 %v1441_v48, %v1440_v45  ;;  %v1443_v51 = vpop.f32.mrb[2].mxu1  ;;  %v1404_v52 = vpop.f32.mrb[3].mxu0 }
  0xfa   :  { %v1405_v53 = vadd.f32 %v1404_v52, %v1403_v49  ;;  %v1444_v54 = vpop.f32.mrb[3].mxu1 }
  0xfb   :  { %v915_v55 = vadd.f32 %v1442_v50, %v1402_v47  ;;  %v1445_v56 = vadd.f32 %v1444_v54, %v1443_v51 }
  0xfd   :  { %v918_v57 = vadd.f32 %v1445_v56, %v1405_v53 }
  0xfe   :  { %v1406_v58 = vpop.f32.mrb[4].mxu0 }
  0xff   :  { %v1446_v59 = vpop.f32.mrb[4].mxu1  ;;  %v1407_v60 = vpop.f32.mrb[5].mxu0 }
 0x100   :  { %v1408_v61 = vadd.f32 %v1407_v60, %v1406_v58  ;;  %v1447_v62 = vpop.f32.mrb[5].mxu1  ;;  %v1409_v63 = vpop.f32.mrb[6].mxu0 }
 0x101   :  { %v1448_v0 = vadd.f32 %v1447_v62, %v1446_v59  ;;  %v1449_v1 = vpop.f32.mrb[6].mxu1  ;;  %v1410_v2 = vpop.f32.mrb[7].mxu0 }
 0x102   :  { %v1411_v3 = vadd.f32 %v1410_v2, %v1409_v63  ;;  %v1450_v4 = vpop.f32.mrb[7].mxu1 }
 0x103   :  { %v923_v5 = vadd.f32 %v1448_v0, %v1408_v61  ;;  %v1451_v6 = vadd.f32 %v1450_v4, %v1449_v1 }
 0x105   :  { %v926_v7 = vadd.f32 %v1451_v6, %v1411_v3 }
 0x106   :  { %v1412_v8 = vpop.f32.mrb[8].mxu0 }
 0x107   :  { %v1452_v9 = vpop.f32.mrb[8].mxu1  ;;  %v1413_v10 = vpop.f32.mrb[9].mxu0 }
 0x108   :  { %v1414_v11 = vadd.f32 %v1413_v10, %v1412_v8  ;;  %v1453_v12 = vpop.f32.mrb[9].mxu1  ;;  %v1415_v13 = vpop.f32.mrb[10].mxu0 }
 0x109   :  { %v1454_v14 = vadd.f32 %v1453_v12, %v1452_v9  ;;  %v1455_v15 = vpop.f32.mrb[10].mxu1  ;;  %v1416_v16 = vpop.f32.mrb[11].mxu0 }
 0x10a   :  { %v1417_v17 = vadd.f32 %v1416_v16, %v1415_v13  ;;  %v1456_v18 = vpop.f32.mrb[11].mxu1 }
 0x10b   :  { %v931_v19 = vadd.f32 %v1454_v14, %v1414_v11  ;;  %v1457_v20 = vadd.f32 %v1456_v18, %v1455_v15 }
 0x10d   :  { %v934_v21 = vadd.f32 %v1457_v20, %v1417_v17 }
 0x10e   :  { %v1418_v22 = vpop.f32.mrb[12].mxu0 }
 0x10f   :  { %v1458_v23 = vpop.f32.mrb[12].mxu1  ;;  %v1419_v24 = vpop.f32.mrb[13].mxu0 }
 0x110   :  { %v1459_v25 = vpop.f32.mrb[13].mxu1  ;;  %v1420_v26 = vadd.f32 %v1419_v24, %v1418_v22  ;;  %v1421_v28 = vpop.f32.mrb[14].mxu0 }
 0x111   :  { %v1460_v27 = vadd.f32 %v1459_v25, %v1458_v23  ;;  %v1461_v29 = vpop.f32.mrb[14].mxu1  ;;  %v1422_v30 = vpop.f32.mrb[15].mxu0 }
 0x112   :  { %v1462_v31 = vpop.f32.mrb[15].mxu1  ;;  %v1423_v33 = vadd.f32 %v1422_v30, %v1421_v28 }
 0x113   :  { %v939_v32 = vadd.f32 %v1460_v27, %v1420_v26  ;;  %v1463_v34 = vadd.f32 %v1462_v31, %v1461_v29 }
 0x115   :  { %v942_v35 = vadd.f32 %v1463_v34, %v1423_v33 }
 0x116   :  { %v1480_v36 = vpop.f32.mrb[16].mxu0 }
 0x117   :  { %v1481_v37 = vpop.f32.mrb[17].mxu0  ;;  %v1520_v40 = vpop.f32.mrb[16].mxu1 }
 0x118   :  { %v1482_v38 = vadd.f32 %v1481_v37, %v1480_v36  ;;  %v1483_v39 = vpop.f32.mrb[18].mxu0  ;;  %v1521_v42 = vpop.f32.mrb[17].mxu1 }
 0x119   :  { %v1484_v41 = vpop.f32.mrb[19].mxu0  ;;  %v1522_v45 = vadd.f32 %v1521_v42, %v1520_v40  ;;  %v1523_v46 = vpop.f32.mrb[18].mxu1 }
 0x11a   :  { %v980_v43 = vadd.f32 %v1482_v38, %v915_v55  ;;  %v1485_v44 = vadd.f32 %v1484_v41, %v1483_v39  ;;  %v1524_v47 = vpop.f32.mrb[19].mxu1 }
 0x11b   :  { %v1525_v49 = vadd.f32 %v1524_v47, %v1523_v46 }
 0x11c   :  { %v983_v48 = vadd.f32 %v1485_v44, %v918_v57  ;;  %v1045_v50 = vadd.f32 %v1522_v45, %v980_v43 }
 0x11e   :  { %v1486_v51 = vpop.f32.mrb[20].mxu0  ;;  %v1048_v52 = vadd.f32 %v1525_v49, %v983_v48 }
 0x11f   :  { %v1487_v53 = vpop.f32.mrb[21].mxu0  ;;  %v1526_v58 = vpop.f32.mrb[20].mxu1 }
 0x120   :  { %v1488_v54 = vadd.f32 %v1487_v53, %v1486_v51  ;;  %v1489_v56 = vpop.f32.mrb[22].mxu0  ;;  %v1527_v60 = vpop.f32.mrb[21].mxu1 }
 0x121   :  { %v1490_v59 = vpop.f32.mrb[23].mxu0  ;;  %v1528_v63 = vadd.f32 %v1527_v60, %v1526_v58  ;;  %v1529_v0 = vpop.f32.mrb[22].mxu1 }
 0x122   :  { %v988_v61 = vadd.f32 %v1488_v54, %v923_v5  ;;  %v1491_v62 = vadd.f32 %v1490_v59, %v1489_v56  ;;  %v1530_v55 = vpop.f32.mrb[23].mxu1 }
 0x123   :  { %v1531_v2 = vadd.f32 %v1530_v55, %v1529_v0 }
 0x124   :  { %v991_v1 = vadd.f32 %v1491_v62, %v926_v7  ;;  %v1053_v3 = vadd.f32 %v1528_v63, %v988_v61 }
 0x126   :  { %v1492_v4 = vpop.f32.mrb[24].mxu0  ;;  %v1056_v57 = vadd.f32 %v1531_v2, %v991_v1 }
 0x127   :  { %v1493_v6 = vpop.f32.mrb[25].mxu0  ;;  %v1532_v10 = vpop.f32.mrb[24].mxu1 }
 0x128   :  { %v1494_v8 = vadd.f32 %v1493_v6, %v1492_v4  ;;  %v1495_v9 = vpop.f32.mrb[26].mxu0  ;;  %v1533_v12 = vpop.f32.mrb[25].mxu1 }
 0x129   :  { %v1496_v11 = vpop.f32.mrb[27].mxu0  ;;  %v1534_v15 = vadd.f32 %v1533_v12, %v1532_v10  ;;  %v1535_v16 = vpop.f32.mrb[26].mxu1 }
 0x12a   :  { %v996_v13 = vadd.f32 %v1494_v8, %v931_v19  ;;  %v1497_v14 = vadd.f32 %v1496_v11, %v1495_v9  ;;  %v1536_v5 = vpop.f32.mrb[27].mxu1 }
 0x12b   :  { %v1537_v18 = vadd.f32 %v1536_v5, %v1535_v16 }
 0x12c   :  { %v999_v17 = vadd.f32 %v1497_v14, %v934_v21  ;;  %v1061_v20 = vadd.f32 %v1534_v15, %v996_v13 }
 0x12e   :  { %v1498_v22 = vpop.f32.mrb[28].mxu0  ;;  %v1064_v7 = vadd.f32 %v1537_v18, %v999_v17 }
 0x12f   :  { %v1499_v23 = vpop.f32.mrb[29].mxu0  ;;  %v1538_v26 = vpop.f32.mrb[28].mxu1 }
 0x130   :  { %v1500_v24 = vadd.f32 %v1499_v23, %v1498_v22  ;;  %v1501_v25 = vpop.f32.mrb[30].mxu0  ;;  %v1539_v28 = vpop.f32.mrb[29].mxu1 }
 0x131   :  { %v1502_v27 = vpop.f32.mrb[31].mxu0  ;;  %v1540_v31 = vadd.f32 %v1539_v28, %v1538_v26  ;;  %v1541_v33 = vpop.f32.mrb[30].mxu1 }
 0x132   :  { %v1004_v29 = vadd.f32 %v1500_v24, %v939_v32  ;;  %v1503_v30 = vadd.f32 %v1502_v27, %v1501_v25  ;;  %v1542_v19 = vpop.f32.mrb[31].mxu1 }
 0x133   :  { %v1543_v36 = vadd.f32 %v1542_v19, %v1541_v33 }
 0x134   :  { %v1007_v34 = vadd.f32 %v1503_v30, %v942_v35  ;;  %v1069_v37 = vadd.f32 %v1540_v31, %v1004_v29 }
 0x136   :  { %v1072_v38 = vadd.f32 %v1543_v36, %v1007_v34 }
 0x137   :  { %v1574_v21 = vpop.f32.mrb[32].mxu0 }
 0x138   :  { %v1118_v39 = vadd.f32 %v1574_v21, %v1053_v3  ;;  %v1578_v40 = vpop.f32.mrb[32].mxu1  ;;  %v1109_v41 = vpop.f32.mrb[33].mxu0 }
 0x139   :  { %v1134_v42 = vadd.f32 %v1578_v40, %v1069_v37  ;;  %v1110_v43 = vadd.f32 %v1109_v41, %v1045_v50  ;;  %v1125_v44 = vpop.f32.mrb[33].mxu1  ;;  %v1575_v45 = vpop.f32.mrb[34].mxu0 }
 0x13a   :  { %v1126_v46 = vadd.f32 %v1125_v44, %v1061_v20  ;;  %v1121_v47 = vadd.f32 %v1575_v45, %v1056_v57  ;;  %v1579_v48 = vpop.f32.mrb[34].mxu1  ;;  %v1112_v32 = vpop.f32.mrb[35].mxu0 }
 0x13b   :  { %v1137_v49 = vadd.f32 %v1579_v48, %v1072_v38  ;;  %v1113_v51 = vadd.f32 %v1112_v32, %v1048_v52  ;;  %v1128_v53 = vpop.f32.mrb[35].mxu1 }
 0x13c   :  { %v1369_v54 = vpack.c.bf16 %v1121_v47, %v1118_v39  ;;  %v1129_v35 = vadd.f32 %v1128_v53, %v1064_v7 }
 0x13d   :  { %v1379_v56 = vpack.c.bf16 %v1137_v49, %v1134_v42  ;;  %v1364_v58 = vpack.c.bf16 %v1113_v51, %v1110_v43  ;;  %v1180_v59 = vadd.f32 %v1113_v51, %v1110_v43 }
 0x13e   :  { %1381 = vst [vmem:[%s2089_s2 + $0x8] sm:$0xff] %v1369_v54   ;;  %v1374_v60 = vpack.c.bf16 %v1129_v35, %v1126_v46 }
 0x13f   :  { %1383 = vst [vmem:[%s2089_s2 + $0x18] sm:$0xff] %v1379_v56   ;;  %1365 = vst [vmem:[%s2089_s2] sm:$0xff] %v1364_v58   ;;  %v1181_v50 = vadd.f32 %v1180_v59, %v1118_v39 }
 0x140   :  { %1382 = vst [vmem:[%s2089_s2 + $0x10] sm:$0xff] %v1374_v60  }
 0x141   :  { %v1182_v52 = vadd.f32 %v1181_v50, %v1121_v47 }
 0x143   :  { %v1183_v61 = vadd.f32 %v1182_v52, %v1126_v46 }
 0x145   :  { %v1184_v62 = vadd.f32 %v1183_v61, %v1129_v35 }
 0x147   :  { %v1185_v63 = vadd.f32 %v1184_v62, %v1134_v42 }
 0x149   :  { %v1186_v0 = vadd.f32 %v1185_v63, %v1137_v49 }
 0x14b   :  { %v1187_v55 = vrot.slane %v1186_v0, 4 }
 0x14d   :  { %v1188_v1 = vadd.f32 %v1187_v55, %v1186_v0 }
 0x14f   :  { %v1189_v2 = vrot.slane %v1188_v1, 2 }
 0x151   :  { %v1190_v3 = vadd.f32 %v1189_v2, %v1188_v1 }
 0x153   :  { %v1191_v4 = vrot.slane %v1190_v3, 1 }
 0x155   :  { %v1192_v57 = vadd.f32 %v1191_v4, %v1190_v3 }
 0x157   :  { %v1193_v6 = vmul.f32 0.015625, %v1192_v57  ;;  %1223 = vst [vmem:[%s2090_s3] sm:$0x1] %v1192_v57 }
 0x159   :  { %v1194_v8 = vsub.f32 %v1110_v43, %v1193_v6  ;;  %v1195_v9 = vsub.f32 %v1113_v51, %v1193_v6  ;;  %v1196_v10 = vsub.f32 %v1118_v39, %v1193_v6  ;;  %v1197_v11 = vsub.f32 %v1121_v47, %v1193_v6 }
 0x15a   :  { %v1198_v12 = vsub.f32 %v1126_v46, %v1193_v6  ;;  %v1199_v13 = vsub.f32 %v1129_v35, %v1193_v6  ;;  %v1200_v14 = vsub.f32 %v1134_v42, %v1193_v6  ;;  %v1201_v15 = vsub.f32 %v1137_v49, %v1193_v6 }
 0x15b   :  { %v1202_v16 = vmul.f32 %v1194_v8, %v1194_v8  ;;  %v1203_v5 = vmul.f32 %v1195_v9, %v1195_v9  ;;  %v1204_v17 = vmul.f32 %v1196_v10, %v1196_v10  ;;  %v1205_v20 = vmul.f32 %v1197_v11, %v1197_v11 }
 0x15c   :  { %v1206_v7 = vmul.f32 %v1198_v12, %v1198_v12  ;;  %v1207_v24 = vmul.f32 %v1199_v13, %v1199_v13  ;;  %v1208_v26 = vmul.f32 %v1200_v14, %v1200_v14  ;;  %v1209_v28 = vmul.f32 %v1201_v15, %v1201_v15 }
 0x15d   :  { %v1210_v18 = vadd.f32 %v1203_v5, %v1202_v16 }
 0x15f   :  { %v1211_v22 = vadd.f32 %v1210_v18, %v1204_v17 }
 0x161   :  { %v1212_v23 = vadd.f32 %v1211_v22, %v1205_v20 }
 0x163   :  { %v1213_v25 = vadd.f32 %v1212_v23, %v1206_v7 }
 0x165   :  { %v1214_v27 = vadd.f32 %v1213_v25, %v1207_v24 }
 0x167   :  { %v1215_v29 = vadd.f32 %v1214_v27, %v1208_v26 }
 0x169   :  { %v1216_v30 = vadd.f32 %v1215_v29, %v1209_v28 }
 0x16b   :  { %v1217_v31 = vrot.slane %v1216_v30, 4 }
 0x16d   :  { %v1218_v33 = vadd.f32 %v1217_v31, %v1216_v30 }
 0x16f   :  { %v1219_v19 = vrot.slane %v1218_v33, 2 }
 0x171   :  { %v1220_v34 = vadd.f32 %v1219_v19, %v1218_v33 }
 0x173   :  { %v1221_v36 = vrot.slane %v1220_v34, 1 }
 0x175   :  { %v1222_v37 = vadd.f32 %v1221_v36, %v1220_v34 }
 0x177   :  { %1224 = vst [vmem:[%s2091_s4] sm:$0x1] %v1222_v37 }

// kernel: feature_map_convolution.12
= control target key start
LH: loop header
LB: loop body
LE: loop exit
PB: predicated region body
PF: predicated region fallthrough
CT: control target
= control target key end

     0   :  { %s422_s0 = inlined_call_operand.vmem [shape: bf16[128,128], index: 0, kind: input, shape index: {}]   ;;  %s423_s1 = inlined_call_operand.vmem [shape: f32[1,128], index: 1, kind: input, shape index: {}]   ;;  %s424_s2 = inlined_call_operand.vmem [shape: f32[1,128], index: 2, kind: input, shape index: {}]   ;;  %s425_s3 = inlined_call_operand.vmem [shape: bf16[128,128], index: 3, kind: output, shape index: {}]  }
   0x1   :  { %v227_v0 = vld [vmem:[%s422_s0] sm:$0xff]   ;;  %v298_v4 = vld [vmem:[%s422_s0 + $0x8] sm:$0xff]   ;;  %v299_v5 = vld [vmem:[%s422_s0 + $0x10] sm:$0xff]  }
   0x2   :  { %v338_v1 = vld [vmem:[%s423_s1] ss:$0 sm:$0xff]  ;;  %v228_v2 = vunpack.c.l.bf16 %v227_v0  ;;  %v229_v3 = vunpack.c.h.bf16 %v227_v0  ;;  %v300_v6 = vld [vmem:[%s422_s0 + $0x18] sm:$0xff]   ;;  %v232_v8 = vunpack.c.l.bf16 %v298_v4  ;;  %v233_v9 = vunpack.c.h.bf16 %v298_v4  ;;  %v302_v33 = vld [vmem:[%s422_s0 + $0x28] sm:$0xff]  }
   0x3   :  { %v352_v7 = vld [vmem:[%s424_s2] ss:$0 sm:$0xff]  ;;  %v236_v10 = vunpack.c.l.bf16 %v299_v5  ;;  %v237_v11 = vunpack.c.h.bf16 %v299_v5  ;;  %v240_v14 = vunpack.c.l.bf16 %v300_v6  ;;  %v241_v15 = vunpack.c.h.bf16 %v300_v6  ;;  %v303_v38 = vld [vmem:[%s422_s0 + $0x30] sm:$0xff]   ;;  %v304_v43 = vld [vmem:[%s422_s0 + $0x38] sm:$0xff]  }
   0x4   :  { %v53_v12 = vmul.f32 %v228_v2, %v338_v1  ;;  %v54_v13 = vmul.f32 %v229_v3, %v338_v1  ;;  %v55_v16 = vmul.f32 %v232_v8, %v338_v1  ;;  %v56_v17 = vmul.f32 %v233_v9, %v338_v1  ;;  %v301_v28 = vld [vmem:[%s422_s0 + $0x20] sm:$0xff]  }
   0x5   :  { %v57_v18 = vmul.f32 %v236_v10, %v338_v1  ;;  %v58_v19 = vmul.f32 %v237_v11, %v338_v1  ;;  %v59_v22 = vmul.f32 %v240_v14, %v338_v1  ;;  %v60_v23 = vmul.f32 %v241_v15, %v338_v1 }
   0x6   :  { %v76_v20 = vadd.f32 %v352_v7, %v53_v12  ;;  %v77_v21 = vadd.f32 %v352_v7, %v54_v13  ;;  %v78_v24 = vadd.f32 %v352_v7, %v55_v16  ;;  %v79_v25 = vadd.f32 %v352_v7, %v56_v17 }
   0x7   :  { %v80_v26 = vadd.f32 %v352_v7, %v57_v18  ;;  %v81_v27 = vadd.f32 %v352_v7, %v58_v19  ;;  %v82_v31 = vadd.f32 %v352_v7, %v59_v22  ;;  %v83_v32 = vadd.f32 %v352_v7, %v60_v23 }
   0x8   :  { %v92_v29 = vmax.f32 %v76_v20, 0.0  ;;  %v93_v30 = vmax.f32 %v77_v21, 0.0  ;;  %v94_v34 = vmax.f32 %v78_v24, 0.0  ;;  %v95_v35 = vmax.f32 %v79_v25, 0.0 }
   0x9   :  { %v96_v36 = vmax.f32 %v80_v26, 0.0  ;;  %v97_v37 = vmax.f32 %v81_v27, 0.0  ;;  %v98_v40 = vmax.f32 %v82_v31, 0.0  ;;  %v99_v41 = vmax.f32 %v83_v32, 0.0 }
   0xa   :  { %v261_v39 = vpack.c.bf16 %v93_v30, %v92_v29  ;;  %v244_v42 = vunpack.c.l.bf16 %v301_v28  ;;  %v266_v44 = vpack.c.bf16 %v95_v35, %v94_v34  ;;  %v245_v46 = vunpack.c.h.bf16 %v301_v28 }
   0xb   :  { %v271_v45 = vpack.c.bf16 %v97_v37, %v96_v36  ;;  %v248_v47 = vunpack.c.l.bf16 %v302_v33  ;;  %v276_v48 = vpack.c.bf16 %v99_v41, %v98_v40  ;;  %v249_v50 = vunpack.c.h.bf16 %v302_v33 }
   0xc   :  { %262 = vst [vmem:[%s425_s3] sm:$0xff] %v261_v39   ;;  %v61_v49 = vmul.f32 %v244_v42, %v338_v1  ;;  %v252_v51 = vunpack.c.l.bf16 %v303_v38  ;;  %305 = vst [vmem:[%s425_s3 + $0x8] sm:$0xff] %v266_v44   ;;  %v62_v52 = vmul.f32 %v245_v46, %v338_v1  ;;  %v253_v54 = vunpack.c.h.bf16 %v303_v38 }
   0xd   :  { %306 = vst [vmem:[%s425_s3 + $0x10] sm:$0xff] %v271_v45   ;;  %v63_v53 = vmul.f32 %v248_v47, %v338_v1  ;;  %v256_v55 = vunpack.c.l.bf16 %v304_v43  ;;  %307 = vst [vmem:[%s425_s3 + $0x18] sm:$0xff] %v276_v48   ;;  %v64_v57 = vmul.f32 %v249_v50, %v338_v1  ;;  %v257_v59 = vunpack.c.h.bf16 %v304_v43 }
   0xe   :  { %v84_v56 = vadd.f32 %v352_v7, %v61_v49  ;;  %v65_v58 = vmul.f32 %v252_v51, %v338_v1  ;;  %v85_v60 = vadd.f32 %v352_v7, %v62_v52  ;;  %v66_v62 = vmul.f32 %v253_v54, %v338_v1 }
   0xf   :  { %v86_v61 = vadd.f32 %v352_v7, %v63_v53  ;;  %v67_v63 = vmul.f32 %v256_v55, %v338_v1  ;;  %v87_v2 = vadd.f32 %v352_v7, %v64_v57  ;;  %v68_v4 = vmul.f32 %v257_v59, %v338_v1 }
  0x10   :  { %v100_v0 = vmax.f32 %v84_v56, 0.0  ;;  %v88_v3 = vadd.f32 %v352_v7, %v65_v58  ;;  %v101_v5 = vmax.f32 %v85_v60, 0.0  ;;  %v89_v8 = vadd.f32 %v352_v7, %v66_v62 }
  0x11   :  { %v102_v6 = vmax.f32 %v86_v61, 0.0  ;;  %v90_v9 = vadd.f32 %v352_v7, %v67_v63  ;;  %v103_v10 = vmax.f32 %v87_v2, 0.0  ;;  %v91_v12 = vadd.f32 %v352_v7, %v68_v4 }
  0x12   :  { %v104_v11 = vmax.f32 %v88_v3, 0.0  ;;  %v281_v13 = vpack.c.bf16 %v101_v5, %v100_v0  ;;  %v105_v14 = vmax.f32 %v89_v8, 0.0 }
  0x13   :  { %v106_v15 = vmax.f32 %v90_v9, 0.0  ;;  %v286_v16 = vpack.c.bf16 %v103_v10, %v102_v6  ;;  %v107_v17 = vmax.f32 %v91_v12, 0.0 }
  0x14   :  { %308 = vst [vmem:[%s425_s3 + $0x20] sm:$0xff] %v281_v13   ;;  %v291_v1 = vpack.c.bf16 %v105_v14, %v104_v11 }
  0x15   :  { %309 = vst [vmem:[%s425_s3 + $0x28] sm:$0xff] %v286_v16   ;;  %v296_v18 = vpack.c.bf16 %v107_v17, %v106_v15 }
  0x16   :  { %310 = vst [vmem:[%s425_s3 + $0x30] sm:$0xff] %v291_v1  }
  0x17   :  { %311 = vst [vmem:[%s425_s3 + $0x38] sm:$0xff] %v296_v18  }

// kernel: feature_map_convolution.11
= control target key start
LH: loop header
LB: loop body
LE: loop exit
PB: predicated region body
PF: predicated region fallthrough
CT: control target
= control target key end

     0   :  { %s1852_s1 = inlined_call_operand.vmem [shape: bf16[640,128], index: 1, kind: input, shape index: {}]   ;;  %s1853_s0 = inlined_call_operand.vmem [shape: bf16[128,640], index: 0, kind: input, shape index: {}]   ;;  %s1854_s2 = inlined_call_operand.vmem [shape: bf16[128,128], index: 2, kind: output, shape index: {0}]   ;;  %s1855_s3 = inlined_call_operand.vmem [shape: f32[1,1,128], index: 3, kind: output, shape index: {1}]   ;;  %s1856_s4 = inlined_call_operand.vmem [shape: f32[1,1,128], index: 4, kind: output, shape index: {2}]  }
   0x1   :  { %v1402_v0 = vld [vmem:[%s1852_s1 + $0x40] sm:$0xff]   ;;  %v1406_v4 = vld [vmem:[%s1852_s1 + $0x48] sm:$0xff]   ;;  %v1410_v8 = vld [vmem:[%s1852_s1 + $0x50] sm:$0xff]  }
   0x2   :  { %v1403_v1 = vld [vmem:[%s1852_s1 + $0xc0] sm:$0xff]   ;;  %1210 = vmatprep.subr.bf16.mxu0 %v1402_v0  ;;  %v1407_v5 = vld [vmem:[%s1852_s1 + $0xc8] sm:$0xff]   ;;  %v1411_v9 = vld [vmem:[%s1852_s1 + $0xd0] sm:$0xff]  }
   0x3   :  { %v1404_v2 = vld [vmem:[%s1852_s1] sm:$0xff]   ;;  %1274 = vmatprep.subr.bf16.mxu1 %v1403_v1  ;;  %v1408_v6 = vld [vmem:[%s1852_s1 + $0x8] sm:$0xff]   ;;  %v1412_v10 = vld [vmem:[%s1852_s1 + $0x10] sm:$0xff]  }
   0x4   :  { %v1405_v3 = vld [vmem:[%s1852_s1 + $0x80] sm:$0xff]   ;;  %1211 = vmatpush3.bf16.msra.mxu0 %v1404_v2  ;;  %v1409_v7 = vld [vmem:[%s1852_s1 + $0x88] sm:$0xff]   ;;  %v1413_v11 = vld [vmem:[%s1852_s1 + $0x90] sm:$0xff]  }
   0x5   :  { %1275 = vmatpush3.bf16.msra.mxu1 %v1405_v3  ;;  %1212 = vmatprep.subr.bf16.mxu0 %v1406_v4  ;;  %v1414_v12 = vld [vmem:[%s1852_s1 + $0x58] sm:$0xff]   ;;  %v1418_v16 = vld [vmem:[%s1852_s1 + $0x60] sm:$0xff]   ;;  %v1422_v20 = vld [vmem:[%s1852_s1 + $0x68] sm:$0xff]  }
   0x6   :  { %1276 = vmatprep.subr.bf16.mxu1 %v1407_v5  ;;  %v1415_v13 = vld [vmem:[%s1852_s1 + $0xd8] sm:$0xff]   ;;  %v1419_v17 = vld [vmem:[%s1852_s1 + $0xe0] sm:$0xff]   ;;  %v1423_v21 = vld [vmem:[%s1852_s1 + $0xe8] sm:$0xff]  }
   0x7   :  { %v1416_v14 = vld [vmem:[%s1852_s1 + $0x18] sm:$0xff]   ;;  %v1420_v18 = vld [vmem:[%s1852_s1 + $0x20] sm:$0xff]   ;;  %v1424_v22 = vld [vmem:[%s1852_s1 + $0x28] sm:$0xff]  }
   0x8   :  { %1213 = vmatpush3.bf16.msra.mxu0 %v1408_v6  ;;  %v1417_v15 = vld [vmem:[%s1852_s1 + $0x98] sm:$0xff]   ;;  %v1421_v19 = vld [vmem:[%s1852_s1 + $0xa0] sm:$0xff]   ;;  %v1425_v23 = vld [vmem:[%s1852_s1 + $0xa8] sm:$0xff]  }
   0x9   :  { %1277 = vmatpush3.bf16.msra.mxu1 %v1409_v7  ;;  %1214 = vmatprep.subr.bf16.mxu0 %v1410_v8  ;;  %v1426_v24 = vld [vmem:[%s1852_s1 + $0x70] sm:$0xff]   ;;  %v1430_v28 = vld [vmem:[%s1852_s1 + $0x78] sm:$0xff]   ;;  %v1439_v35 = vld [vmem:[%s1853_s0 + $0xc] ss:$20 sps:$4 sm:$0xff]  }
   0xa   :  { %1278 = vmatprep.subr.bf16.mxu1 %v1411_v9  ;;  %v1427_v25 = vld [vmem:[%s1852_s1 + $0xf0] sm:$0xff]   ;;  %v1431_v29 = vld [vmem:[%s1852_s1 + $0xf8] sm:$0xff]   ;;  %v1440_v36 = vld [vmem:[%s1852_s1 + $0x100] sm:$0xff]   ;;  %720 = vmatprep.mubr.bf16.mxu1 %v1439_v35 }
   0xb   :  { %v1428_v26 = vld [vmem:[%s1852_s1 + $0x30] sm:$0xff]   ;;  %v1432_v30 = vld [vmem:[%s1852_s1 + $0x38] sm:$0xff]   ;;  %v1441_v37 = vld [vmem:[%s1853_s0 + $0x2c] ss:$20 sps:$4 sm:$0xff]  }
   0xc   :  { %1215 = vmatpush3.bf16.msra.mxu0 %v1412_v10  ;;  %v1429_v27 = vld [vmem:[%s1852_s1 + $0xb0] sm:$0xff]   ;;  %v1433_v31 = vld [vmem:[%s1852_s1 + $0xb8] sm:$0xff]   ;;  %v1447_v39 = vld [vmem:[%s1852_s1 + $0x108] sm:$0xff]  }
   0xd   :  { %1279 = vmatpush3.bf16.msra.mxu1 %v1413_v11  ;;  %1216 = vmatprep.subr.bf16.mxu0 %v1414_v12  ;;  %v1434_v32 = vld [vmem:[%s1853_s0] ss:$20 sps:$4 sm:$0xff]   ;;  %v1436_v33 = vld [vmem:[%s1853_s0 + $0x4] ss:$20 sps:$4 sm:$0xff]   ;;  %v1437_v34 = vld [vmem:[%s1853_s0 + $0x8] ss:$20 sps:$4 sm:$0xff]  }
   0xe   :  { %1280 = vmatprep.subr.bf16.mxu1 %v1415_v13  ;;  %623 = vmatprep.mubr.bf16.mxu0 %v1436_v33  ;;  %v1443_v38 = vld [vmem:[%s1853_s0 + $0x34] ss:$20 sps:$4 sm:$0xff]   ;;  %v1446_v41 = vld [vmem:[%s1853_s0 + $0x30] ss:$20 sps:$4 sm:$0xff]   ;;  %v1461_v45 = vld [vmem:[%s1852_s1 + $0x118] sm:$0xff]  }
   0xf   :  { %v1445_v40 = vld [vmem:[%s1853_s0 + $0x28] ss:$20 sps:$4 sm:$0xff]   ;;  %v1454_v44 = vld [vmem:[%s1852_s1 + $0x110] sm:$0xff]   ;;  %v1453_v47 = vld [vmem:[%s1853_s0 + $0x58] ss:$20 sps:$4 sm:$0xff]  }
  0x10   :  { %1217 = vmatpush3.bf16.msra.mxu0 %v1416_v14  ;;  %v1448_v42 = vld [vmem:[%s1853_s0 + $0x54] ss:$20 sps:$4 sm:$0xff]   ;;  %v1450_v43 = vld [vmem:[%s1853_s0 + $0x5c] ss:$20 sps:$4 sm:$0xff]   ;;  %v1457_v49 = vld [vmem:[%s1853_s0 + $0x84] ss:$20 sps:$4 sm:$0xff]  }
  0x11   :  { %1281 = vmatpush3.bf16.msra.mxu1 %v1417_v15  ;;  %1218 = vmatprep.subr.bf16.mxu0 %v1418_v16  ;;  %v1452_v46 = vld [vmem:[%s1853_s0 + $0x50] ss:$20 sps:$4 sm:$0xff]   ;;  %v1475_v51 = vld [vmem:[%s1852_s1 + $0x128] sm:$0xff]   ;;  %v1460_v53 = vld [vmem:[%s1853_s0 + $0x80] ss:$20 sps:$4 sm:$0xff]  }
  0x12   :  { %1282 = vmatprep.subr.bf16.mxu1 %v1419_v17  ;;  %v1455_v48 = vld [vmem:[%s1853_s0 + $0x7c] ss:$20 sps:$4 sm:$0xff]   ;;  %v1468_v50 = vld [vmem:[%s1852_s1 + $0x120] sm:$0xff]   ;;  %v1459_v52 = vld [vmem:[%s1853_s0 + $0x78] ss:$20 sps:$4 sm:$0xff]  }
  0x13   :  { %v1462_v54 = vld [vmem:[%s1853_s0 + $0xa4] ss:$20 sps:$4 sm:$0xff]   ;;  %v1482_v55 = vld [vmem:[%s1852_s1 + $0x130] sm:$0xff]   ;;  %v1464_v56 = vld [vmem:[%s1853_s0 + $0xac] ss:$20 sps:$4 sm:$0xff]  }
  0x14   :  { %1219 = vmatpush3.bf16.msra.mxu0 %v1420_v18  ;;  %v1489_v57 = vld [vmem:[%s1852_s1 + $0x138] sm:$0xff]   ;;  %v1466_v58 = vld [vmem:[%s1853_s0 + $0xa0] ss:$20 sps:$4 sm:$0xff]   ;;  %v1474_v63 = vld [vmem:[%s1853_s0 + $0xd0] ss:$20 sps:$4 sm:$0xff]  }
  0x15   :  { %1283 = vmatpush3.bf16.msra.mxu1 %v1421_v19  ;;  %1220 = vmatprep.subr.bf16.mxu0 %v1422_v20  ;;  %v1467_v59 = vld [vmem:[%s1853_s0 + $0xa8] ss:$20 sps:$4 sm:$0xff]   ;;  %v1469_v60 = vld [vmem:[%s1853_s0 + $0xcc] ss:$20 sps:$4 sm:$0xff]   ;;  %v1480_v2 = vld [vmem:[%s1853_s0 + $0xf0] ss:$20 sps:$4 sm:$0xff]  }
  0x16   :  { %1284 = vmatprep.subr.bf16.mxu1 %v1423_v21  ;;  %v1471_v61 = vld [vmem:[%s1853_s0 + $0xd4] ss:$20 sps:$4 sm:$0xff]   ;;  %v1478_v1 = vld [vmem:[%s1853_s0 + $0xfc] ss:$20 sps:$4 sm:$0xff]   ;;  %v1481_v3 = vld [vmem:[%s1853_s0 + $0xf8] ss:$20 sps:$4 sm:$0xff]  }
  0x17   :  { %v1473_v62 = vld [vmem:[%s1853_s0 + $0xc8] ss:$20 sps:$4 sm:$0xff]   ;;  %v1485_v5 = vld [vmem:[%s1853_s0 + $0x124] ss:$20 sps:$4 sm:$0xff]   ;;  %v1488_v7 = vld [vmem:[%s1853_s0 + $0x120] ss:$20 sps:$4 sm:$0xff]  }
  0x18   :  { %1221 = vmatpush3.bf16.msra.mxu0 %v1424_v22  ;;  %v1476_v0 = vld [vmem:[%s1853_s0 + $0xf4] ss:$20 sps:$4 sm:$0xff]   ;;  %v1483_v4 = vld [vmem:[%s1853_s0 + $0x11c] ss:$20 sps:$4 sm:$0xff]   ;;  %v1487_v6 = vld [vmem:[%s1853_s0 + $0x118] ss:$20 sps:$4 sm:$0xff]  }
  0x19   :  { %1285 = vmatpush3.bf16.msra.mxu1 %v1425_v23  ;;  %1222 = vmatprep.subr.bf16.mxu0 %v1426_v24  ;;  %v1490_v8 = vld [vmem:[%s1853_s0 + $0x10] ss:$20 sps:$4 sm:$0xff]   ;;  %v1492_v10 = vld [vmem:[%s1853_s0 + $0x38] ss:$20 sps:$4 sm:$0xff]   ;;  %v1494_v12 = vld [vmem:[%s1853_s0 + $0x60] ss:$20 sps:$4 sm:$0xff]  }
  0x1a   :  { %1286 = vmatprep.subr.bf16.mxu1 %v1427_v25  ;;  %v1491_v9 = vld [vmem:[%s1853_s0 + $0xb0] ss:$20 sps:$4 sm:$0xff]   ;;  %v1493_v11 = vld [vmem:[%s1853_s0 + $0xd8] ss:$20 sps:$4 sm:$0xff]   ;;  %v1495_v13 = vld [vmem:[%s1853_s0 + $0x100] ss:$20 sps:$4 sm:$0xff]  }
  0x1b   :  { %v1496_v14 = vld [vmem:[%s1853_s0 + $0x88] ss:$20 sps:$4 sm:$0xff]  }
  0x1c   :  { %1223 = vmatpush3.bf16.msra.mxu0 %v1428_v26  ;;  %v1497_v15 = vld [vmem:[%s1853_s0 + $0x128] ss:$20 sps:$4 sm:$0xff]  }
  0x1d   :  { %1287 = vmatpush3.bf16.msra.mxu1 %v1429_v27  ;;  %1224 = vmatprep.subr.bf16.mxu0 %v1430_v28 }
  0x1e   :  { %1288 = vmatprep.subr.bf16.mxu1 %v1431_v29 }
  0x20   :  { %1225 = vmatpush3.bf16.msra.mxu0 %v1432_v30 }
  0x21   :  { %1289 = vmatpush3.bf16.msra.mxu1 %v1433_v31  ;;  %1354 = vmatprep.subr.bf16.mxu0 %v1440_v36 }
  0x22   :  { %1386 = vmatprep.subr.bf16.mxu1 %v1440_v36 }
  0x23   :  { %624 = vmatmul.mubr.bf16.vlgmr.msra.gmra.mrb[0].mxu0 %v1434_v32 }
  0x24   :  { %721 = vmatmul.mubr.bf16.vlgmr.msra.gmra.mrb[0].mxu1 %v1437_v34  ;;  %1355 = vmatpush3.bf16.msra.mxu0 %v1440_v36 }
  0x25   :  { %631 = vmatprep.mubr.bf16.mxu0 %v1441_v37  ;;  %728 = vmatprep.mubr.bf16.mxu1 %v1443_v38 }
  0x26   :  { %1394 = vmatpush3.bf16.msra.mxu1 %v1440_v36  ;;  %1356 = vmatprep.subr.bf16.mxu0 %v1447_v39 }
  0x27   :  { %1387 = vmatprep.subr.bf16.mxu1 %v1447_v39 }
  0x28   :  { %1357 = vmatpush3.bf16.msra.mxu0 %v1447_v39 }
  0x29   :  { %1358 = vmatprep.subr.bf16.mxu0 %v1454_v44 }
  0x2a   :  { %1395 = vmatpush3.bf16.msra.mxu1 %v1447_v39 }
  0x2b   :  { %632 = vmatmul.mubr.bf16.gmra.mrb[4].mxu0 %v1445_v40  ;;  %1388 = vmatprep.subr.bf16.mxu1 %v1454_v44 }
  0x2c   :  { %729 = vmatmul.mubr.bf16.gmra.mrb[4].mxu1 %v1446_v41  ;;  %639 = vmatprep.mubr.bf16.mxu0 %v1448_v42 }
  0x2d   :  { %736 = vmatprep.mubr.bf16.mxu1 %v1450_v43  ;;  %1359 = vmatpush3.bf16.msra.mxu0 %v1454_v44 }
  0x2e   :  { %1360 = vmatprep.subr.bf16.mxu0 %v1461_v45  ;;  %1396 = vmatpush3.bf16.msra.mxu1 %v1454_v44 }
  0x2f   :  { %1389 = vmatprep.subr.bf16.mxu1 %v1461_v45 }
  0x31   :  { %1361 = vmatpush3.bf16.msra.mxu0 %v1461_v45 }
  0x32   :  { %1362 = vmatprep.subr.bf16.mxu0 %v1468_v50  ;;  %1397 = vmatpush3.bf16.msra.mxu1 %v1461_v45 }
  0x33   :  { %640 = vmatmul.mubr.bf16.gmra.mrb[8].mxu0 %v1452_v46  ;;  %1390 = vmatprep.subr.bf16.mxu1 %v1468_v50 }
  0x34   :  { %737 = vmatmul.mubr.bf16.gmra.mrb[8].mxu1 %v1453_v47  ;;  %647 = vmatprep.mubr.bf16.mxu0 %v1455_v48 }
  0x35   :  { %744 = vmatprep.mubr.bf16.mxu1 %v1457_v49  ;;  %1363 = vmatpush3.bf16.msra.mxu0 %v1468_v50 }
  0x36   :  { %1364 = vmatprep.subr.bf16.mxu0 %v1475_v51  ;;  %1398 = vmatpush3.bf16.msra.mxu1 %v1468_v50 }
  0x37   :  { %1391 = vmatprep.subr.bf16.mxu1 %v1475_v51 }
  0x39   :  { %1365 = vmatpush3.bf16.msra.mxu0 %v1475_v51 }
  0x3a   :  { %1366 = vmatprep.subr.bf16.mxu0 %v1482_v55  ;;  %1399 = vmatpush3.bf16.msra.mxu1 %v1475_v51 }
  0x3b   :  { %648 = vmatmul.mubr.bf16.gmra.mrb[12].mxu0 %v1459_v52  ;;  %1392 = vmatprep.subr.bf16.mxu1 %v1482_v55 }
  0x3c   :  { %745 = vmatmul.mubr.bf16.gmra.mrb[12].mxu1 %v1460_v53  ;;  %655 = vmatprep.mubr.bf16.mxu0 %v1462_v54 }
  0x3d   :  { %752 = vmatprep.mubr.bf16.mxu1 %v1464_v56  ;;  %1367 = vmatpush3.bf16.msra.mxu0 %v1482_v55 }
  0x3e   :  { %1368 = vmatprep.subr.bf16.mxu0 %v1489_v57  ;;  %1400 = vmatpush3.bf16.msra.mxu1 %v1482_v55 }
  0x3f   :  { %1393 = vmatprep.subr.bf16.mxu1 %v1489_v57 }
  0x41   :  { %1369 = vmatpush3.bf16.msra.mxu0 %v1489_v57 }
  0x42   :  { %1401 = vmatpush3.bf16.msra.mxu1 %v1489_v57 }
  0x43   :  { %656 = vmatmul.mubr.bf16.gmra.mrb[16].mxu0 %v1466_v58 }
  0x44   :  { %753 = vmatmul.mubr.bf16.gmra.mrb[16].mxu1 %v1467_v59  ;;  %663 = vmatprep.mubr.bf16.mxu0 %v1469_v60 }
  0x45   :  { %760 = vmatprep.mubr.bf16.mxu1 %v1471_v61 }
  0x4b   :  { %664 = vmatmul.mubr.bf16.gmra.mrb[20].mxu0 %v1473_v62 }
  0x4c   :  { %761 = vmatmul.mubr.bf16.gmra.mrb[20].mxu1 %v1474_v63  ;;  %671 = vmatprep.mubr.bf16.mxu0 %v1476_v0 }
  0x4d   :  { %768 = vmatprep.mubr.bf16.mxu1 %v1478_v1 }
  0x53   :  { %672 = vmatmul.mubr.bf16.gmra.mrb[24].mxu0 %v1480_v2 }
  0x54   :  { %769 = vmatmul.mubr.bf16.gmra.mrb[24].mxu1 %v1481_v3  ;;  %679 = vmatprep.mubr.bf16.mxu0 %v1483_v4 }
  0x55   :  { %776 = vmatprep.mubr.bf16.mxu1 %v1485_v5 }
  0x5b   :  { %680 = vmatmul.mubr.bf16.gmra.mrb[28].mxu0 %v1487_v6 }
  0x5c   :  { %777 = vmatmul.mubr.bf16.gmra.mrb[28].mxu1 %v1488_v7  ;;  %1370 = vmatprep.mubr.bf16.mxu0 %v1490_v8 }
  0x5d   :  { %1378 = vmatprep.mubr.bf16.mxu1 %v1491_v9 }
  0x63   :  { %1371 = vmatmul.mubr.bf16.vlgmr.msra.gmra.mrb[32].mxu0 %v1492_v10 }
  0x64   :  { %1379 = vmatmul.mubr.bf16.vlgmr.msra.gmra.mrb[32].mxu1 %v1493_v11  ;;  %1374 = vmatprep.mubr.bf16.mxu0 %v1494_v12 }
  0x65   :  { %1382 = vmatprep.mubr.bf16.mxu1 %v1495_v13 }
  0x6b   :  { %1375 = vmatmul.mubr.bf16.gmra.mrb[36].mxu0 %v1496_v14 }
  0x6c   :  { %1383 = vmatmul.mubr.bf16.gmra.mrb[36].mxu1 %v1497_v15 }
  0xf6   :  { %v1226_v16 = vpop.f32.mrb[0].mxu0 }
  0xf7   :  { %v1290_v17 = vpop.f32.mrb[0].mxu1  ;;  %v1227_v18 = vpop.f32.mrb[1].mxu0 }
  0xf8   :  { %v1228_v19 = vadd.f32 %v1227_v18, %v1226_v16  ;;  %v1291_v20 = vpop.f32.mrb[1].mxu1  ;;  %v1229_v21 = vpop.f32.mrb[2].mxu0 }
  0xf9   :  { %v1292_v22 = vadd.f32 %v1291_v20, %v1290_v17  ;;  %v1293_v23 = vpop.f32.mrb[2].mxu1  ;;  %v1230_v24 = vpop.f32.mrb[3].mxu0 }
  0xfa   :  { %v1231_v25 = vadd.f32 %v1230_v24, %v1229_v21  ;;  %v1294_v26 = vpop.f32.mrb[3].mxu1 }
  0xfb   :  { %v1295_v27 = vadd.f32 %v1294_v26, %v1293_v23  ;;  %v1763_v28 = vadd.f32 %v1292_v22, %v1228_v19 }
  0xfd   :  { %v1765_v29 = vadd.f32 %v1295_v27, %v1231_v25 }
  0xfe   :  { %v1232_v30 = vpop.f32.mrb[4].mxu0 }
  0xff   :  { %v1296_v31 = vpop.f32.mrb[4].mxu1  ;;  %v1233_v32 = vpop.f32.mrb[5].mxu0 }
 0x100   :  { %v1234_v33 = vadd.f32 %v1233_v32, %v1232_v30  ;;  %v1297_v34 = vpop.f32.mrb[5].mxu1  ;;  %v1235_v35 = vpop.f32.mrb[6].mxu0 }
 0x101   :  { %v1298_v36 = vadd.f32 %v1297_v34, %v1296_v31  ;;  %v1299_v37 = vpop.f32.mrb[6].mxu1  ;;  %v1236_v38 = vpop.f32.mrb[7].mxu0 }
 0x102   :  { %v1237_v39 = vadd.f32 %v1236_v38, %v1235_v35  ;;  %v1300_v40 = vpop.f32.mrb[7].mxu1 }
 0x103   :  { %v1301_v41 = vadd.f32 %v1300_v40, %v1299_v37  ;;  %v1767_v42 = vadd.f32 %v1298_v36, %v1234_v33 }
 0x105   :  { %v1769_v43 = vadd.f32 %v1301_v41, %v1237_v39 }
 0x106   :  { %v1238_v44 = vpop.f32.mrb[8].mxu0 }
 0x107   :  { %v1302_v45 = vpop.f32.mrb[8].mxu1  ;;  %v1239_v46 = vpop.f32.mrb[9].mxu0 }
 0x108   :  { %v1240_v47 = vadd.f32 %v1239_v46, %v1238_v44  ;;  %v1303_v48 = vpop.f32.mrb[9].mxu1  ;;  %v1241_v49 = vpop.f32.mrb[10].mxu0 }
 0x109   :  { %v1304_v50 = vadd.f32 %v1303_v48, %v1302_v45  ;;  %v1305_v51 = vpop.f32.mrb[10].mxu1  ;;  %v1242_v52 = vpop.f32.mrb[11].mxu0 }
 0x10a   :  { %v1243_v53 = vadd.f32 %v1242_v52, %v1241_v49  ;;  %v1306_v54 = vpop.f32.mrb[11].mxu1 }
 0x10b   :  { %v1307_v55 = vadd.f32 %v1306_v54, %v1305_v51  ;;  %v1771_v56 = vadd.f32 %v1304_v50, %v1240_v47 }
 0x10d   :  { %v1773_v57 = vadd.f32 %v1307_v55, %v1243_v53 }
 0x10e   :  { %v1244_v58 = vpop.f32.mrb[12].mxu0 }
 0x10f   :  { %v1308_v59 = vpop.f32.mrb[12].mxu1  ;;  %v1245_v60 = vpop.f32.mrb[13].mxu0 }
 0x110   :  { %v1246_v61 = vadd.f32 %v1245_v60, %v1244_v58  ;;  %v1309_v62 = vpop.f32.mrb[13].mxu1  ;;  %v1247_v63 = vpop.f32.mrb[14].mxu0 }
 0x111   :  { %v1310_v0 = vadd.f32 %v1309_v62, %v1308_v59  ;;  %v1311_v1 = vpop.f32.mrb[14].mxu1  ;;  %v1248_v2 = vpop.f32.mrb[15].mxu0 }
 0x112   :  { %v1249_v3 = vadd.f32 %v1248_v2, %v1247_v63  ;;  %v1312_v4 = vpop.f32.mrb[15].mxu1 }
 0x113   :  { %v1313_v5 = vadd.f32 %v1312_v4, %v1311_v1  ;;  %v1775_v6 = vadd.f32 %v1310_v0, %v1246_v61 }
 0x115   :  { %v1777_v7 = vadd.f32 %v1313_v5, %v1249_v3 }
 0x116   :  { %v1250_v8 = vpop.f32.mrb[16].mxu0 }
 0x117   :  { %v1314_v9 = vpop.f32.mrb[16].mxu1  ;;  %v1251_v10 = vpop.f32.mrb[17].mxu0 }
 0x118   :  { %v1252_v11 = vadd.f32 %v1251_v10, %v1250_v8  ;;  %v1315_v12 = vpop.f32.mrb[17].mxu1  ;;  %v1253_v13 = vpop.f32.mrb[18].mxu0 }
 0x119   :  { %v1316_v14 = vadd.f32 %v1315_v12, %v1314_v9  ;;  %v1317_v15 = vpop.f32.mrb[18].mxu1  ;;  %v1254_v16 = vpop.f32.mrb[19].mxu0 }
 0x11a   :  { %v1255_v17 = vadd.f32 %v1254_v16, %v1253_v13  ;;  %v1318_v18 = vpop.f32.mrb[19].mxu1 }
 0x11b   :  { %v1319_v19 = vadd.f32 %v1318_v18, %v1317_v15  ;;  %v755_v20 = vadd.f32 %v1316_v14, %v1252_v11 }
 0x11d   :  { %v758_v21 = vadd.f32 %v1319_v19, %v1255_v17 }
 0x11e   :  { %v1256_v22 = vpop.f32.mrb[20].mxu0 }
 0x11f   :  { %v1320_v23 = vpop.f32.mrb[20].mxu1  ;;  %v1257_v24 = vpop.f32.mrb[21].mxu0 }
 0x120   :  { %v1258_v25 = vadd.f32 %v1257_v24, %v1256_v22  ;;  %v1321_v26 = vpop.f32.mrb[21].mxu1  ;;  %v1259_v27 = vpop.f32.mrb[22].mxu0 }
 0x121   :  { %v1322_v30 = vadd.f32 %v1321_v26, %v1320_v23  ;;  %v1323_v31 = vpop.f32.mrb[22].mxu1  ;;  %v1260_v32 = vpop.f32.mrb[23].mxu0 }
 0x122   :  { %v1261_v33 = vadd.f32 %v1260_v32, %v1259_v27  ;;  %v1324_v34 = vpop.f32.mrb[23].mxu1 }
 0x123   :  { %v1325_v35 = vadd.f32 %v1324_v34, %v1323_v31  ;;  %v763_v36 = vadd.f32 %v1322_v30, %v1258_v25 }
 0x125   :  { %v766_v37 = vadd.f32 %v1325_v35, %v1261_v33 }
 0x126   :  { %v1262_v38 = vpop.f32.mrb[24].mxu0 }
 0x127   :  { %v1326_v39 = vpop.f32.mrb[24].mxu1  ;;  %v1263_v40 = vpop.f32.mrb[25].mxu0 }
 0x128   :  { %v1264_v41 = vadd.f32 %v1263_v40, %v1262_v38  ;;  %v1327_v44 = vpop.f32.mrb[25].mxu1  ;;  %v1265_v45 = vpop.f32.mrb[26].mxu0 }
 0x129   :  { %v1328_v46 = vadd.f32 %v1327_v44, %v1326_v39  ;;  %v1329_v47 = vpop.f32.mrb[26].mxu1  ;;  %v1266_v48 = vpop.f32.mrb[27].mxu0 }
 0x12a   :  { %v1267_v49 = vadd.f32 %v1266_v48, %v1265_v45  ;;  %v1330_v50 = vpop.f32.mrb[27].mxu1 }
 0x12b   :  { %v1331_v51 = vadd.f32 %v1330_v50, %v1329_v47  ;;  %v771_v52 = vadd.f32 %v1328_v46, %v1264_v41 }
 0x12d   :  { %v774_v53 = vadd.f32 %v1331_v51, %v1267_v49 }
 0x12e   :  { %v1268_v54 = vpop.f32.mrb[28].mxu0 }
 0x12f   :  { %v1332_v55 = vpop.f32.mrb[28].mxu1  ;;  %v1269_v58 = vpop.f32.mrb[29].mxu0 }
 0x130   :  { %v1270_v59 = vadd.f32 %v1269_v58, %v1268_v54  ;;  %v1333_v60 = vpop.f32.mrb[29].mxu1  ;;  %v1271_v61 = vpop.f32.mrb[30].mxu0 }
 0x131   :  { %v1334_v62 = vadd.f32 %v1333_v60, %v1332_v55  ;;  %v1335_v63 = vpop.f32.mrb[30].mxu1  ;;  %v1272_v0 = vpop.f32.mrb[31].mxu0 }
 0x132   :  { %v1273_v1 = vadd.f32 %v1272_v0, %v1271_v61  ;;  %v1336_v2 = vpop.f32.mrb[31].mxu1 }
 0x133   :  { %v1337_v3 = vadd.f32 %v1336_v2, %v1335_v63  ;;  %v779_v4 = vadd.f32 %v1334_v62, %v1270_v59 }
 0x135   :  { %v782_v5 = vadd.f32 %v1337_v3, %v1273_v1 }
 0x136   :  { %v1372_v8 = vpop.f32.mrb[32].mxu0 }
 0x137   :  { %v1780_v9 = vadd.f32 %v1372_v8, %v1767_v42  ;;  %v1380_v10 = vpop.f32.mrb[32].mxu1  ;;  %v819_v11 = vpop.f32.mrb[33].mxu0 }
 0x138   :  { %v1782_v12 = vadd.f32 %v1380_v10, %v763_v36  ;;  %v1785_v13 = vadd.f32 %v819_v11, %v1763_v28  ;;  %v851_v14 = vpop.f32.mrb[33].mxu1  ;;  %v1373_v15 = vpop.f32.mrb[34].mxu0 }
 0x139   :  { %v1787_v16 = vadd.f32 %v851_v14, %v755_v20  ;;  %v1790_v17 = vadd.f32 %v1373_v15, %v1769_v43  ;;  %v1381_v18 = vpop.f32.mrb[34].mxu1  ;;  %v822_v19 = vpop.f32.mrb[35].mxu0 }
 0x13a   :  { %v1792_v22 = vadd.f32 %v1381_v18, %v766_v37  ;;  %v823_v42 = vadd.f32 %v822_v19, %v1765_v29  ;;  %v854_v23 = vpop.f32.mrb[35].mxu1 }
 0x13b   :  { %v1171_v24 = vpack.c.bf16 %v1790_v17, %v1780_v9  ;;  %v1797_v25 = vadd.f32 %v854_v23, %v758_v21 }
 0x13c   :  { %v1191_v28 = vpack.c.bf16 %v1792_v22, %v1782_v12  ;;  %v1166_v20 = vpack.c.bf16 %v823_v42, %v1785_v13  ;;  %v962_v43 = vadd.f32 %v823_v42, %v1785_v13 }
 0x13d   :  { %1203 = vst [vmem:[%s1854_s2 + $0x8] sm:$0xff] %v1171_v24   ;;  %v1186_v29 = vpack.c.bf16 %v1797_v25, %v1787_v16 }
 0x13e   :  { %1207 = vst [vmem:[%s1854_s2 + $0x28] sm:$0xff] %v1191_v28   ;;  %1167 = vst [vmem:[%s1854_s2] sm:$0xff] %v1166_v20   ;;  %v963_v21 = vadd.f32 %v962_v43, %v1780_v9  ;;  %v1376_v26 = vpop.f32.mrb[36].mxu0 }
 0x13f   :  { %1206 = vst [vmem:[%s1854_s2 + $0x20] sm:$0xff] %v1186_v29   ;;  %v844_v27 = vadd.f32 %v1376_v26, %v1775_v6  ;;  %v1384_v30 = vpop.f32.mrb[36].mxu1  ;;  %v835_v31 = vpop.f32.mrb[37].mxu0 }
 0x140   :  { %v876_v32 = vadd.f32 %v1384_v30, %v779_v4  ;;  %v836_v33 = vadd.f32 %v835_v31, %v1771_v56  ;;  %v964_v34 = vadd.f32 %v963_v21, %v1790_v17  ;;  %v867_v35 = vpop.f32.mrb[37].mxu1  ;;  %v1377_v36 = vpop.f32.mrb[38].mxu0 }
 0x141   :  { %v868_v37 = vadd.f32 %v867_v35, %v771_v52  ;;  %v847_v38 = vadd.f32 %v1377_v36, %v1777_v7  ;;  %v1385_v39 = vpop.f32.mrb[38].mxu1  ;;  %v838_v40 = vpop.f32.mrb[39].mxu0 }
 0x142   :  { %v965_v41 = vadd.f32 %v964_v34, %v836_v33  ;;  %v879_v44 = vadd.f32 %v1385_v39, %v782_v5  ;;  %v839_v45 = vadd.f32 %v838_v40, %v1773_v57  ;;  %v870_v46 = vpop.f32.mrb[39].mxu1 }
 0x143   :  { %v1181_v6 = vpack.c.bf16 %v847_v38, %v844_v27  ;;  %v871_v47 = vadd.f32 %v870_v46, %v774_v53 }
 0x144   :  { %v1201_v48 = vpack.c.bf16 %v879_v44, %v876_v32  ;;  %v1176_v49 = vpack.c.bf16 %v839_v45, %v836_v33  ;;  %v966_v50 = vadd.f32 %v965_v41, %v839_v45 }
 0x145   :  { %1205 = vst [vmem:[%s1854_s2 + $0x18] sm:$0xff] %v1181_v6   ;;  %v1196_v56 = vpack.c.bf16 %v871_v47, %v868_v37 }
 0x146   :  { %1209 = vst [vmem:[%s1854_s2 + $0x38] sm:$0xff] %v1201_v48   ;;  %1204 = vst [vmem:[%s1854_s2 + $0x10] sm:$0xff] %v1176_v49   ;;  %v967_v57 = vadd.f32 %v966_v50, %v844_v27 }
 0x147   :  { %1208 = vst [vmem:[%s1854_s2 + $0x30] sm:$0xff] %v1196_v56  }
 0x148   :  { %v968_v7 = vadd.f32 %v967_v57, %v847_v38 }
 0x14a   :  { %v969_v51 = vadd.f32 %v968_v7, %v1787_v16 }
 0x14c   :  { %v970_v52 = vadd.f32 %v969_v51, %v1797_v25 }
 0x14e   :  { %v971_v53 = vadd.f32 %v970_v52, %v1782_v12 }
 0x150   :  { %v972_v54 = vadd.f32 %v971_v53, %v1792_v22 }
 0x152   :  { %v973_v55 = vadd.f32 %v972_v54, %v868_v37 }
 0x154   :  { %v974_v58 = vadd.f32 %v973_v55, %v871_v47 }
 0x156   :  { %v975_v59 = vadd.f32 %v974_v58, %v876_v32 }
 0x158   :  { %v976_v60 = vadd.f32 %v975_v59, %v879_v44 }
 0x15a   :  { %v977_v61 = vrot.slane %v976_v60, 4 }
 0x15c   :  { %v978_v62 = vadd.f32 %v977_v61, %v976_v60 }
 0x15e   :  { %v979_v63 = vrot.slane %v978_v62, 2 }
 0x160   :  { %v980_v0 = vadd.f32 %v979_v63, %v978_v62 }
 0x162   :  { %v981_v1 = vrot.slane %v980_v0, 1 }
 0x164   :  { %v982_v2 = vadd.f32 %v981_v1, %v980_v0 }
 0x166   :  { %v983_v3 = vmul.f32 0.0078125, %v982_v2  ;;  %1037 = vst [vmem:[%s1855_s3] sm:$0x1] %v982_v2 }
 0x168   :  { %v984_v4 = vsub.f32 %v1785_v13, %v983_v3  ;;  %v985_v5 = vsub.f32 %v823_v42, %v983_v3  ;;  %v986_v8 = vsub.f32 %v1780_v9, %v983_v3  ;;  %v987_v10 = vsub.f32 %v1790_v17, %v983_v3 }
 0x169   :  { %v988_v11 = vsub.f32 %v836_v33, %v983_v3  ;;  %v989_v14 = vsub.f32 %v839_v45, %v983_v3  ;;  %v990_v15 = vsub.f32 %v844_v27, %v983_v3  ;;  %v991_v18 = vsub.f32 %v847_v38, %v983_v3 }
 0x16a   :  { %v992_v19 = vsub.f32 %v1787_v16, %v983_v3  ;;  %v993_v23 = vsub.f32 %v1797_v25, %v983_v3  ;;  %v994_v24 = vsub.f32 %v1782_v12, %v983_v3  ;;  %v995_v28 = vsub.f32 %v1792_v22, %v983_v3 }
 0x16b   :  { %v996_v20 = vsub.f32 %v868_v37, %v983_v3  ;;  %v997_v43 = vsub.f32 %v871_v47, %v983_v3  ;;  %v998_v13 = vsub.f32 %v876_v32, %v983_v3  ;;  %v999_v42 = vsub.f32 %v879_v44, %v983_v3 }
 0x16c   :  { %v1000_v29 = vmul.f32 %v984_v4, %v984_v4  ;;  %v1001_v9 = vmul.f32 %v985_v5, %v985_v5  ;;  %v1002_v21 = vmul.f32 %v986_v8, %v986_v8  ;;  %v1003_v26 = vmul.f32 %v987_v10, %v987_v10 }
 0x16d   :  { %v1004_v27 = vmul.f32 %v988_v11, %v988_v11  ;;  %v1005_v33 = vmul.f32 %v989_v14, %v989_v14  ;;  %v1006_v34 = vmul.f32 %v990_v15, %v990_v15  ;;  %v1007_v35 = vmul.f32 %v991_v18, %v991_v18 }
 0x16e   :  { %v1016_v17 = vadd.f32 %v1001_v9, %v1000_v29  ;;  %v1008_v36 = vmul.f32 %v992_v19, %v992_v19  ;;  %v1009_v37 = vmul.f32 %v993_v23, %v993_v23  ;;  %v1010_v32 = vmul.f32 %v994_v24, %v994_v24 }
 0x16f   :  { %v1011_v40 = vmul.f32 %v995_v28, %v995_v28  ;;  %v1012_v44 = vmul.f32 %v996_v20, %v996_v20  ;;  %v1013_v46 = vmul.f32 %v997_v43, %v997_v43  ;;  %v1014_v47 = vmul.f32 %v998_v13, %v998_v13 }
 0x170   :  { %v1017_v30 = vadd.f32 %v1016_v17, %v1002_v21  ;;  %v1015_v49 = vmul.f32 %v999_v42, %v999_v42 }
 0x172   :  { %v1018_v31 = vadd.f32 %v1017_v30, %v1003_v26 }
 0x174   :  { %v1019_v16 = vadd.f32 %v1018_v31, %v1004_v27 }
 0x176   :  { %v1020_v25 = vadd.f32 %v1019_v16, %v1005_v33 }
 0x178   :  { %v1021_v12 = vadd.f32 %v1020_v25, %v1006_v34 }
 0x17a   :  { %v1022_v22 = vadd.f32 %v1021_v12, %v1007_v35 }
 0x17c   :  { %v1023_v38 = vadd.f32 %v1022_v22, %v1008_v36 }
 0x17e   :  { %v1024_v39 = vadd.f32 %v1023_v38, %v1009_v37 }
 0x180   :  { %v1025_v41 = vadd.f32 %v1024_v39, %v1010_v32 }
 0x182   :  { %v1026_v45 = vadd.f32 %v1025_v41, %v1011_v40 }
 0x184   :  { %v1027_v6 = vadd.f32 %v1026_v45, %v1012_v44 }
 0x186   :  { %v1028_v48 = vadd.f32 %v1027_v6, %v1013_v46 }
 0x188   :  { %v1029_v50 = vadd.f32 %v1028_v48, %v1014_v47 }
 0x18a   :  { %v1030_v56 = vadd.f32 %v1029_v50, %v1015_v49 }
 0x18c   :  { %v1031_v57 = vrot.slane %v1030_v56, 4 }
 0x18e   :  { %v1032_v7 = vadd.f32 %v1031_v57, %v1030_v56 }
 0x190   :  { %v1033_v51 = vrot.slane %v1032_v7, 2 }
 0x192   :  { %v1034_v52 = vadd.f32 %v1033_v51, %v1032_v7 }
 0x194   :  { %v1035_v53 = vrot.slane %v1034_v52, 1 }
 0x196   :  { %v1036_v54 = vadd.f32 %v1035_v53, %v1034_v52 }
 0x198   :  { %1038 = vst [vmem:[%s1856_s4] sm:$0x1] %v1036_v54 }

// kernel: feature_map_convolution.13
= control target key start
LH: loop header
LB: loop body
LE: loop exit
PB: predicated region body
PF: predicated region fallthrough
CT: control target
= control target key end

     0   :  { %9 = vsyncpa [#allocation3], 0  ;;  %s845_s0 = inlined_call_operand.vmem [shape: bf16[2,5,5,128], index: 0, kind: input, shape index: {}]   ;;  %s846_s1 = inlined_call_operand.vmem [shape: bf16[2,5,4,128], index: 1, kind: input, shape index: {}]   ;;  %s847_s2 = inlined_call_operand.vmem [shape: bf16[2,4,5,128], index: 2, kind: input, shape index: {}]   ;;  %s848_s3 = inlined_call_operand.vmem [shape: bf16[2,4,4,128], index: 3, kind: input, shape index: {}]   ;;  %s849_s4 = inlined_call_operand.hbm [shape: f32[2,4,4,128], index: 4, kind: output, shape index: {}]  }
   0x1   :  { %11 = vsyncpa [#allocation3 + $0x1], 0  ;;  %s683_s15 = smov 0   ;;  %s685_s16 = smov 0  }
   0x2   :  { %s687_s17 = smov 0   ;;  %s689_s18 = smov 0  }
   0x3 LB: > { %s704_s19 = sadd.s32 4294967295, %s653_s18   ;;  %s516_s20 = sadd.s32 4294967294, %s653_s18   ;;  %s653_s18 = sphi %s689_s18, %s855_s18   ;;  %s649_s17 = sphi %s687_s17, %s854_s17   ;;  %s645_s16 = sphi %s685_s16, %s853_s16   ;;  %s641_s15 = sphi %s683_s15, %s852_s15  }
   0x4   : > { %s708_s21 = sadd.s32 1, %s653_s18   ;;  %s128_s22 = sadd.s32 1, %s649_s17 }
   0x5   : > { %s125_s23 = ssub.s32 %s653_s18, %s708_s21  ;;  %p138_p0 = scmp.ne.s32.totalorder %s649_s17, %s645_s16 }
   0x6   : > { %p126_p1 = scmp.eq.s32.totalorder %s125_s23, 0  ;;  %p139_p2 = scmp.eq.s32.totalorder %s704_s19, 1 }
   0x7   : > { %p144_p3 = scmp.ne.s32.totalorder %s645_s16, %s641_s15  ;;  %p145_p4 = scmp.eq.s32.totalorder %s516_s20, 1 }
   0x8   : > { %s719_s24 = scalar_select %p126_p1, %s649_s17, %s128_s22  }
   0x9   : > { %p721_p5 = por %p139_p2, %p138_p0  ;;  %p725_p6 = por %p145_p4, %p144_p3 }
   0xa   : > { %p519_p7 = scmp.ge.s32.totalorder %s653_s18, 1  ;;  %p195_p8 = scmp.lt.s32.totalorder %s653_s18, 3 }
   0xc   : > { %p196_p9 = pnand %p519_p7, %p195_p8 }
   0xd   : > { %p236_p10 = scmp.lt.s32.totalorder (!%p196_p9), %s704_s19, 1  ;;  %s534_s5 = sshll.u32 (!%p196_p9), %s704_s19, 8 }
   0xe   : > { %199 = sbr.rel (%p196_p9) target bundleno = 77 (0x4d), region = 36  ;;  %s800_s8 = scalar_lea.hbm (!%p196_p9), %s849_s4, %s534_s5 }
  0x15   : > { %s733_s27 = scalar_select %p236_p10, %s704_s19, 1 }
  0x16   : > { %s655_s19 = smov [#allocation2]  }
  0x17   : > { %s548_s28 = smul.u32 20, %s733_s27  ;;  %s532_s29 = sshll.u32 %s733_s27, 4 }
  0x18   : > { %s740_s6 = scalar_lea.vmem %s847_s2, %s532_s29  ;;  %s549_s10 = smul.u32 10, %s733_s27 }
  0x19   : > { %s240_s9 = scalar_lea.vmem %s845_s0, %s548_s28  ;;  %v746_v3 = vld [vmem:[%s740_s6] sm:$0x7]  ;;  %v749_v6 = vld [vmem:[%s740_s6 + $0x4] sm:$0x7]  ;;  %v760_v34 = vld [vmem:[%s740_s6 + $0x8] sm:$0x7] }
  0x1a   : > { %v256_v0 = vld [vmem:[%s240_s9] sm:$0x7]  ;;  %v257_v1 = vld [vmem:[%s240_s9 + $0x4] sm:$0x7]  ;;  %v258_v2 = vld [vmem:[%s240_s9 + $0x8] sm:$0x7]  ;;  %s765_s13 = scalar_lea.vmem %s846_s1, %s549_s10 }
  0x1b   : > { %v275_v4 = vshrl.u32 %v256_v0, 16  ;;  %v278_v5 = vshll.u32 %v256_v0, 16  ;;  %v284_v7 = vshrl.u32 %v257_v1, 16  ;;  %v287_v8 = vshll.u32 %v257_v1, 16  ;;  %v753_v15 = vld [vmem:[%s240_s9 + $0xc] sm:$0x7] }
  0x1c   : > { %v293_v9 = vshrl.u32 %v258_v2, 16  ;;  %v296_v10 = vshll.u32 %v258_v2, 16  ;;  %v349_v13 = vshrl.u32 %v746_v3, 16  ;;  %v352_v14 = vshll.u32 %v746_v3, 16  ;;  %v260_v27 = vld [vmem:[%s240_s9 + $0x10] sm:$0x7] }
  0x1d   : > { %v277_v11 = vrot.slane %v275_v4, 4  ;;  %v280_v12 = vrot.slane %v278_v5, 5  ;;  %v286_v16 = vrot.slane %v284_v7, 4  ;;  %v289_v17 = vrot.slane %v287_v8, 5  ;;  %v269_v44 = vld [vmem:[%s740_s6 + $0xc] sm:$0x7] }
  0x1e   : > { %v295_v18 = vrot.slane %v293_v9, 4  ;;  %v298_v19 = vrot.slane %v296_v10, 5  ;;  %v351_v21 = vrot.slane %v349_v13, 4  ;;  %v354_v22 = vrot.slane %v352_v14, 5  ;;  %v261_v48 = vld [vmem:[%s765_s13] sm:$0x3] }
  0x1f   : > { %v281_v20 = vor.u32 %v280_v12, %v277_v11  ;;  %v358_v23 = vshrl.u32 %v749_v6, 16  ;;  %v290_v24 = vor.u32 %v289_v17, %v286_v16  ;;  %v361_v26 = vshll.u32 %v749_v6, 16  ;;  %v262_v53 = vld [vmem:[%s765_s13 + $0x2] sm:$0x3]  ;;  %s533_s14 = sshll.u32 %s733_s27, 3  ;;  %s233_s27 = sand.u32 1, %s645_s16  }
  0x20   : > { %v299_v25 = vor.u32 %v298_v19, %v295_v18  ;;  %v302_v28 = vshrl.u32 %v753_v15, 16  ;;  %v305_v37 = vshll.u32 %v753_v15, 16  ;;  %v323_v38 = vshrl.u32 %v260_v27, 16  ;;  %s779_s23 = scalar_lea.vmem %s848_s3, %s533_s14  ;;  %s520_s28 = sshll.u32 %s233_s27, 4 }
  0x21   : > { %v282_v29 = vrot.slane %v281_v20, 4  ;;  %v291_v30 = vrot.slane %v290_v24, 4  ;;  %v360_v32 = vrot.slane %v358_v23, 4  ;;  %v363_v33 = vrot.slane %v361_v26, 5  ;;  %v270_v19 = vld [vmem:[%s779_s23] sm:$0x3] }
  0x22   : > { %v300_v31 = vrot.slane %v299_v25, 4  ;;  %v304_v36 = vrot.slane %v302_v28, 4  ;;  %v355_v40 = vor.u32 %v354_v22, %v351_v21  ;;  %v326_v42 = vshll.u32 %v260_v27, 16  ;;  %v264_v21 = vld [vmem:[%s765_s13 + $0x6] sm:$0x3]  ;;  %s235_s29 = scalar_lea.vmem [#allocation2], %s520_s28 }
  0x23   : > { %v314_v35 = vmax.bf16 %v282_v29, %v256_v0  ;;  %v315_v39 = vmax.bf16 %v291_v30, %v257_v1  ;;  %v307_v45 = vrot.slane %v305_v37, 5  ;;  %v325_v46 = vrot.slane %v323_v38, 4  ;;  %v271_v23 = vld [vmem:[%s779_s23 + $0x2] sm:$0x3]  ;;  %v265_v29 = vld [vmem:[%s765_s13 + $0x8] sm:$0x3] }
  0x24   : > { %v316_v41 = vmax.bf16 %v300_v31, %v258_v2  ;;  %v367_v47 = vshrl.u32 %v760_v34, 16  ;;  %v364_v50 = vor.u32 %v363_v33, %v360_v32  ;;  %v328_v52 = vrot.slane %v326_v42, 5  ;;  %s418_s30 = sshll.u32 %s235_s29, 4  ;;  %s804_s9 = scalar_lea.sflag [#allocation3], %s233_s27  ;;  %s795_s30 = int_to_ptr.vmem [resolvable:$true] %s418_s30 }
  0x25   : > { %v318_v43 = vmax.bf16 %v314_v35, %v257_v1  ;;  %v319_v49 = vmax.bf16 %v315_v39, %v258_v2  ;;  %v308_v55 = vor.u32 %v307_v45, %v304_v36  ;;  %v370_v57 = vshll.u32 %v760_v34, 16  ;;  %v263_v2 = vld [vmem:[%s765_s13 + $0x4] sm:$0x3]  ;;  %s591_s10 = scalar_lea.vmem %s795_s30, 256  ;;  %s595_s11 = sshll.u32 %s655_s19, 4  ;;  %s596_s11 = int_to_ptr.vmem [resolvable:$false] %s595_s11 }
  0x26   : > { %v320_v51 = vmax.bf16 %v316_v41, %v753_v15  ;;  %v369_v56 = vrot.slane %v367_v47, 4  ;;  %v329_v59 = vor.u32 %v328_v52, %v325_v46  ;;  %v376_v60 = vshrl.u32 %v269_v44, 16  ;;  %v273_v41 = vld [vmem:[%s779_s23 + $0x6] sm:$0x3]  ;;  %p592_p11 = scmp.ne.s32.totalorder %s795_s30, %s591_s10  ;;  %s597_s12 = scalar_lea.vmem %s596_s11, 512 }
  0x27   : > { %v332_v54 = vmax.bf16 %v318_v43, %v291_v30  ;;  %v333_v58 = vmax.bf16 %v319_v49, %v300_v31  ;;  %v379_v61 = vshll.u32 %v269_v44, 16  ;;  %v356_v63 = vrot.slane %v355_v40, 4  ;;  %p598_p0 = scmp.lt.s32.totalorder %s795_s30, %s596_s11  ;;  %p599_p1 = scmp.lt.s32.totalorder %s597_s12, %s591_s10 }
  0x28   : > { %v309_v0 = vrot.slane %v308_v55, 4  ;;  %v372_v1 = vrot.slane %v370_v57, 5  ;;  %v330_v5 = vrot.slane %v329_v59, 4  ;;  %v378_v7 = vrot.slane %v376_v60, 4  ;;  %p593_p12 = pnand %p592_p11, %p721_p5 }
  0x29   : > { %v336_v62 = vmax.bf16 %v332_v54, %v261_v48  ;;  %v337_v4 = vmax.bf16 %v333_v58, %v262_v53  ;;  %v381_v8 = vrot.slane %v379_v61, 5  ;;  %v365_v14 = vrot.slane %v364_v50, 4  ;;  %p600_p2 = por %p599_p1, %p598_p0 }
  0x2a   : > { %v317_v10 = vmax.bf16 %v309_v0, %v753_v15  ;;  %v334_v11 = vmax.bf16 %v320_v51, %v309_v0  ;;  %v373_v12 = vor.u32 %v372_v1, %v369_v56  ;;  %p594_p13 = pneg %p593_p12 }
  0x2b   : > { %v340_v9 = vmax.bf16 %v336_v62, %v262_v53  ;;  %v341_v13 = vmax.bf16 %v337_v4, %v263_v2  ;;  %v382_v22 = vor.u32 %v381_v8, %v378_v7 }
  0x2c   : > { %v321_v17 = vmax.bf16 %v317_v10, %v260_v27  ;;  %v338_v18 = vmax.bf16 %v334_v11, %v263_v2  ;;  %v374_v26 = vrot.slane %v373_v12, 4  ;;  %p601_p3 = pnand %p600_p2, %p594_p13 }
  0x2d   : > { %v344_v16 = vmax.bf16 %v340_v9, %v746_v3  ;;  %v345_v20 = vmax.bf16 %v341_v13, %v749_v6  ;;  %v272_v6 = vld [vmem:[%s779_s23 + $0x4] sm:$0x3]  ;;  %v383_v35 = vrot.slane %v382_v22, 4 }
  0x2e   : > { %v335_v15 = vmax.bf16 %v330_v5, %v321_v17  ;;  %v342_v25 = vmax.bf16 %v338_v18, %v264_v21 }
  0x2f   : > { %v388_v24 = vmax.bf16 %v356_v63, %v344_v16  ;;  %v389_v28 = vmax.bf16 %v365_v14, %v345_v20 }
  0x30   : > { %v339_v3 = vmax.bf16 %v335_v15, %v264_v21  ;;  %v346_v27 = vmax.bf16 %v342_v25, %v760_v34 }
  0x31   : > { %v392_v30 = vmax.bf16 %v388_v24, %v270_v19  ;;  %v393_v31 = vmax.bf16 %v389_v28, %v271_v23 }
  0x32   : > { %v343_v33 = vmax.bf16 %v339_v3, %v265_v29  ;;  %v390_v36 = vmax.bf16 %v374_v26, %v346_v27 }
  0x33   : > { %v396_v32 = vunpack.c.l.bf16 %v392_v30  ;;  %v397_v37 = vunpack.c.l.bf16 %v393_v31 }
  0x34   : > { %v347_v38 = vmax.bf16 %v343_v33, %v269_v44  ;;  %v394_v39 = vmax.bf16 %v390_v36, %v272_v6 }
  0x35   : > { %v545_v40 = vcombine.low %v396_v32, %v397_v37 }
  0x36   : > { %v391_v42 = vmax.bf16 %v383_v35, %v347_v38  ;;  %v398_v43 = vunpack.c.l.bf16 %v394_v39 }
  0x37   : > { %539 = vst [vmem:[%s235_s29] sm:$0xff] %v545_v40  }
  0x38   : > { %v395_v34 = vmax.bf16 %v391_v42, %v273_v41 }
  0x3a   : > { %v399_v45 = vunpack.c.l.bf16 %v395_v34 }
  0x3c   : > { %v546_v44 = vcombine.low %v398_v43, %v399_v45 }
  0x3e   : > { %547 = vst [vmem:[%s235_s29 + $0x8] sm:$0xff] %v546_v44  }
  0x3f   : > { %604 = shalt.err (!%p601_p3)
}
  0x40   : > { %s605_s13 = scalar_lea.hbm %s800_s8, 256  ;;  %s609_s22 = scalar_lea.hbm %s849_s4, 512 }
  0x41   : > { %p606_p4 = scmp.ne.s32.totalorder %s800_s8, %s605_s13  ;;  %p610_p9 = scmp.lt.u32.totalorder %s800_s8, %s849_s4 }
  0x42   : > { %p611_p10 = scmp.lt.u32.totalorder %s609_s22, %s605_s13  ;;  %p613_p12 = scmp.lt.u32.totalorder %s605_s13, %s800_s8 }
  0x43   : > { %p607_p7 = pnand %p606_p4, %p721_p5 }
  0x44   : > { %p612_p11 = por %p611_p10, %p610_p9 }
  0x45   : > { %p608_p8 = pneg %p607_p7 }
  0x46   : > { %p614_p13 = por %p613_p12, %p612_p11 }
  0x48   : > { %p615_p0 = pnand %p614_p13, %p608_p8 }
  0x4a   : > { %618 = shalt.err (!%p615_p0)
}
  0x4b   : > { %s656_s28 = smov 64   ;;  %s657_s29 = smov 4  }
  0x4c   : > { %550 = dma.vmem_to_hbm [thread:$0]  (%p721_p5), %s795_s30, 256, %s800_s8, %s804_s9, %s656_s28, %s656_s28, %s657_s29  }
  0x4d PF: > { %p556_p1 = scmp.ge.s32.totalorder %s653_s18, 2  ;;  %s433_s5 = sand.u32 1, %s641_s15  }
  0x4e   : > { %s434_s6 = scalar_lea.sflag [#allocation3], %s433_s5 }
  0x4f   : > { %p553_p2 = pnand %p556_p1, %p725_p6 }
  0x51   : > { %636 = dma.done.wait (!%p553_p2), %s434_s6, 256  }
  0x52   : > { %638 = vsyncadd (!%p553_p2), %s434_s6, 4294967040  ;;  %p14_p3 = scmp.ge.s32.totalorder %s708_s21, 4   ;;  %s852_s15 = smov %s645_s16 }
  0x53   : > { %s853_s16 = smov %s649_s17  ;;  %s854_s17 = smov %s719_s24 }
  0x54   : > { %s855_s18 = smov %s708_s21  ;;  %16 = sbr.rel (!%p14_p3) target bundleno = 3 (0x3), region = 80 }
  0x5b   :  { %439 = vsyncpa [#allocation3], 1 }
  0x5c   :  { %441 = vsyncpa [#allocation3 + $0x1], 1 }

</bundles_post_ra>
